<compile_context>
chip_gen: v7x
topology: tpu7x:2x2x1
jax: 0.10.0
libtpu: 0.0.40
codegen_flags: <defaults>
</compile_context>

<pallas_src>
import math

import numpy as np
import jax
import jax.numpy as jnp
from jax import lax
from jax.experimental import pallas as pl
from jax.experimental.pallas import tpu as pltpu


# ----------------------------------------------------------------------------
# Host-side constant builders (vectorized numpy, O(HW)-sized)
# ----------------------------------------------------------------------------
def _col_wrap_masks(h, w):
    """(2, h*w) 0/1 masks killing column-wrap taps: row 0 -> dx=-1, row 1 -> dx=+1."""
    jj = np.tile(np.arange(w), h)
    return np.stack([(jj >= 1), (jj <= w - 2)]).astype(np.float32)


def _upsample2_select(nz, sd, sd2sq):
    """(nz, sd*sd + 2*(sd+1)) 0/1 matrix: right-multiplying the channel-masked
    style rows performs the nearest x2 upsample straight into the flat,
    zero-margin (margin = sd+1) layout used by the 3x3 im2col slices."""
    sd2 = sd // 2
    sdsq = sd * sd
    hwsp = sdsq + 2 * (sd + 1)
    yy, xx = np.meshgrid(np.arange(sd), np.arange(sd), indexing="ij")
    src = ((yy // 2) * sd2 + (xx // 2)).reshape(-1)               # (sdsq,)
    m = np.zeros((nz, hwsp), np.float32)
    m[:, sd + 1:sd + 1 + sdsq] = (np.arange(nz)[:, None] % sd2sq
                                  == src[None, :]).astype(np.float32)
    return m


def _channel_select_mask(cp, cin, sd2sq):
    """(cp, cin*sd2sq) 0/1: row c keeps only channel-c's sd2sq style lanes."""
    m = np.zeros((cp, cin * sd2sq), np.float32)
    for c in range(cin):
        m[c, c * sd2sq:(c + 1) * sd2sq] = 1.0
    return m


def _nearest_resize(sd, h, w):
    """(sd*sd, h*w) 0/1: F.interpolate(mode='nearest') from (sd,sd) to (h,w)."""
    ii, jj = np.meshgrid(np.arange(h), np.arange(w), indexing="ij")
    src = ((ii * sd) // h) * sd + ((jj * sd) // w)
    r = np.zeros((sd * sd, h * w), np.float32)
    r[src.reshape(-1), np.arange(h * w)] = 1.0
    return r


def _choose_block_batch(b, max_bt=8):
    """Batch tile: amortize per-step overhead, but keep >=2 grid steps so the
    batch axis can shard across TensorCores (v7x megacore); require B % Bt == 0.
    max_bt keeps the col-scratch working set comfortably inside scoped VMEM."""
    bt = min(max_bt, max(b, 1))
    while bt > 1 and b // bt < 2:
        bt -= 1
    while b % bt != 0:
        bt -= 1
    return bt


# ----------------------------------------------------------------------------
# Pallas wrapper: whole SpatialModulatedConv2d forward (default path)
# ----------------------------------------------------------------------------
def spatial_modulated_conv2d(x, style, params, spatial_dim, block_batch=None):
    B, Cin, H, W = x.shape
    Cout = params["weight"].shape[1]
    style_dim = style.shape[-1]
    SD = spatial_dim
    SD2 = SD // 2
    SD2SQ = SD2 * SD2
    SDSQ = SD * SD
    NZ = Cin * SD2SQ
    HW = H * W
    CP = ((Cin + 15) // 16) * 16      # bf16-sublane-tile aligned channel pad
    OFFM = W + 1                      # zero-margin width of the flat image row
    HWP = HW + 2 * OFFM
    OFFS = SD + 1                     # same for the (SD x SD) style map
    HWSP = SDSQ + 2 * OFFS
    SQRT2 = math.sqrt(2.0)
    Bt = block_batch if block_batch is not None else _choose_block_batch(B)
    assert B % Bt == 0
    bf16 = jnp.bfloat16

    # ------------- parameter / constant prep (tiny; NO copies of x) ---------
    x_flat = x.reshape(B, Cin, HW).astype(jnp.float32)
    style3 = style.reshape(B, 1, style_dim).astype(jnp.float32)

    cscale = 1.0 / math.sqrt(Cin * 9)          # EqualConv / modulated-conv scale

    def conv_mat(w):
        # (Co, Cin, 3, 3) -> (Co, 9*CP) bf16, row order k*CP + c, k = ky*3 + kx
        m = jnp.transpose(w.astype(jnp.float32) * cscale, (0, 2, 3, 1))
        m = jnp.pad(m.reshape(w.shape[0], 9, Cin), ((0, 0), (0, 0), (0, CP - Cin)))
        return m.reshape(w.shape[0], 9 * CP).astype(bf16)

    w_main = conv_mat(params["weight"][0])                              # (Cout, 9CP)
    w_sty = jnp.concatenate([conv_mat(params["w_mod_w"]),
                             conv_mat(params["w_mod_b"])], axis=0)      # (2Cout, 9CP)
    b_sty = jnp.concatenate([params["b_mod_w"], params["b_mod_b"]]
                            ).astype(jnp.float32).reshape(2 * Cout, 1)

    lscale = 1.0 / math.sqrt(style_dim)        # EqualLinear scale (lr_mul = 1)
    wlinT = (params["w_lin"].astype(jnp.float32) * lscale).T.astype(bf16)  # (sd, NZ)
    blin = params["b_lin"].astype(jnp.float32).reshape(1, NZ)

    cmask = jnp.asarray(_col_wrap_masks(H, W))                          # (2, HW)
    smask = jnp.asarray(_col_wrap_masks(SD, SD))                        # (2, SDSQ)
    selm = jnp.asarray(_channel_select_mask(CP, Cin, SD2SQ))            # (CP, NZ)
    mup = jnp.asarray(_upsample2_select(NZ, SD, SD2SQ), dtype=bf16)     # (NZ, HWSP)
    rout = jnp.asarray(_nearest_resize(SD, H, W))                       # (SDSQ, HW)

    # ------------- kernel ----------------------------------------------------
    def kernel(x_ref, style_ref, wmain_ref, cmask_ref, wlin_ref, blin_ref,
               sel_ref, mup_ref, wsty_ref, bsty_ref, smask_ref, rout_ref,
               out_ref, xpad, colm, spad, cols):
        # ---- build zero-margin flat images in VMEM (margins + pad rows only)
        zmarg = jnp.zeros((Bt * CP, OFFM), jnp.float32)
        xpad[:, 0:OFFM] = zmarg
        xpad[:, OFFM + HW:HWP] = zmarg
        for bt in range(Bt):
            r0 = bt * CP
            if CP > Cin:
                xpad[r0 + Cin:r0 + CP, OFFM:OFFM + HW] = jnp.zeros(
                    (CP - Cin, HW), jnp.float32)
            xpad[r0:r0 + Cin, OFFM:OFFM + HW] = x_ref[bt]

        # ---- main 3x3 conv: im2col (static lane slices) + ONE MXU matmul ----
        mask_l = cmask_ref[0:1, :]      # dx = -1 column-wrap kill
        mask_r = cmask_ref[1:2, :]      # dx = +1 column-wrap kill
        for bt in range(Bt):
            r0 = bt * CP
            for k in range(9):
                dy, dx = k // 3 - 1, k % 3 - 1
                tap = xpad[r0:r0 + CP, pl.ds(OFFM + dy * W + dx, HW)]
                if dx == -1:
                    tap = tap * mask_l
                elif dx == 1:
                    tap = tap * mask_r
                # dx == 0 taps need no mask: the W+1 zero margin handles dy.
                colm[k * CP:(k + 1) * CP, bt * HW:(bt + 1) * HW] = tap.astype(bf16)
        y = jnp.dot(wmain_ref[...], colm[...],
                    preferred_element_type=jnp.float32)           # (Cout, Bt*HW)

        # ---- style branch: EqualLinear + fused_leaky_relu -------------------
        sty = style_ref[...].reshape(Bt, style_dim)
        z = jnp.dot(sty.astype(bf16), wlin_ref[...],
                    preferred_element_type=jnp.float32) + blin_ref[...]
        a = jnp.where(z >= 0.0, z, 0.2 * z) * SQRT2               # (Bt, NZ)

        # channel-select (sublane broadcast x constant 0/1 mask) + nearest x2
        # upsample into the zero-margin (Bt*CP, HWSP) layout with ONE matmul.
        prod = (a[:, None, :] * sel_ref[...]).reshape(Bt * CP, NZ)
        spad[...] = jnp.dot(prod.astype(bf16), mup_ref[...],
                            preferred_element_type=jnp.float32)   # (Bt*CP, HWSP)

        # the two style 3x3 EqualConv2d fused into one matmul (+ their biases)
        smask_l = smask_ref[0:1, :]
        smask_r = smask_ref[1:2, :]
        for bt in range(Bt):
            r0 = bt * CP
            for k in range(9):
                dy, dx = k // 3 - 1, k % 3 - 1
                tap = spad[r0:r0 + CP, pl.ds(OFFS + dy * SD + dx, SDSQ)]
                if dx == -1:
                    tap = tap * smask_l
                elif dx == 1:
                    tap = tap * smask_r
                cols[k * CP:(k + 1) * CP, bt * SDSQ:(bt + 1) * SDSQ] = tap.astype(bf16)
        swb = jnp.dot(wsty_ref[...], cols[...],
                      preferred_element_type=jnp.float32) + bsty_ref[...]

        # ---- per-image epilogue: instance norm + nearest resize + modulate --
        inv_hw = 1.0 / HW
        for bt in range(Bt):
            yb = y[:, bt * HW:(bt + 1) * HW]                      # (Cout, HW)
            mu = jnp.sum(yb, axis=1, keepdims=True) * inv_hw
            var = jnp.maximum(
                jnp.sum(yb * yb, axis=1, keepdims=True) * inv_hw - mu * mu, 0.0)
            ynorm = (yb - mu) * lax.rsqrt(var + 1e-5)
            swb_hw = jnp.dot(swb[:, bt * SDSQ:(bt + 1) * SDSQ], rout_ref[...],
                             preferred_element_type=jnp.float32)  # (2Cout, HW)
            sw = swb_hw[:Cout, :]
            sb = swb_hw[Cout:, :]
            out_ref[bt, :, :] = (ynorm * (1.0 + 0.3 * sw)
                                 + 0.3 * sb).astype(out_ref.dtype)

    grid_spec = pltpu.PrefetchScalarGridSpec(
        num_scalar_prefetch=0,
        grid=(B // Bt,),
        in_specs=[
            pl.BlockSpec((Bt, Cin, HW), lambda b: (b, 0, 0)),        # x (flat, unpadded)
            pl.BlockSpec((Bt, 1, style_dim), lambda b: (b, 0, 0)),   # style vectors
            pl.BlockSpec((Cout, 9 * CP), lambda b: (0, 0)),          # main conv weight
            pl.BlockSpec((2, HW), lambda b: (0, 0)),                 # column-wrap masks
            pl.BlockSpec((style_dim, NZ), lambda b: (0, 0)),         # EqualLinear w^T
            pl.BlockSpec((1, NZ), lambda b: (0, 0)),                 # EqualLinear bias
            pl.BlockSpec((CP, NZ), lambda b: (0, 0)),                # channel-select mask
            pl.BlockSpec((NZ, HWSP), lambda b: (0, 0)),              # nearest x2 upsample
            pl.BlockSpec((2 * Cout, 9 * CP), lambda b: (0, 0)),      # fused style conv w
            pl.BlockSpec((2 * Cout, 1), lambda b: (0, 0)),           # fused style conv b
            pl.BlockSpec((2, SDSQ), lambda b: (0, 0)),               # style wrap masks
            pl.BlockSpec((SDSQ, HW), lambda b: (0, 0)),              # nearest resize
        ],
        out_specs=pl.BlockSpec((Bt, Cout, HW), lambda b: (b, 0, 0)),
        scratch_shapes=[
            pltpu.VMEM((Bt * CP, HWP), jnp.float32),      # zero-margin images
            pltpu.VMEM((9 * CP, Bt * HW), bf16),          # im2col (main conv)
            pltpu.VMEM((Bt * CP, HWSP), jnp.float32),     # padded upsampled style maps
            pltpu.VMEM((9 * CP, Bt * SDSQ), bf16),        # im2col (style convs)
        ],
    )

    out = pl.pallas_call(
        kernel,
        out_shape=jax.ShapeDtypeStruct((B, Cout, HW), jnp.float32),
        grid_spec=grid_spec,
        compiler_params=pltpu.CompilerParams(
            dimension_semantics=("parallel",),
        ),
    )(x_flat, style3, w_main, cmask, wlinT, blin, selm, mup, w_sty, b_sty,
      smask, rout)

    return out.reshape(B, Cout, H, W)


# ----------------------------------------------------------------------------
# Plain-JAX reference (validation).  Matmul operands are cast to bf16 exactly
# like the kernel (f32 accumulation), so this validates the kernel's structure
# tightly; the bf16-operand rounding itself is the intended perf tradeoff vs.
# the all-f32 PyTorch module.
# ----------------------------------------------------------------------------
def reference_forward(x, style, params, spatial_dim):
    B, Cin, H, W = x.shape
    style_dim = style.shape[-1]
    SD = spatial_dim
    SD2 = SD // 2
    dn = ("NCHW", "OIHW", "NCHW")
    bf = jnp.bfloat16
    cscale = 1.0 / math.sqrt(Cin * 9)

    out = lax.conv_general_dilated(
        x.astype(bf), (params["weight"][0] * cscale).astype(bf), (1, 1),
        [(1, 1), (1, 1)], dimension_numbers=dn,
        preferred_element_type=jnp.float32)
    mu = jnp.mean(out, axis=(2, 3), keepdims=True)
    var = jnp.mean(jnp.square(out - mu), axis=(2, 3), keepdims=True)
    out = (out - mu) * lax.rsqrt(var + 1e-5)

    lscale = 1.0 / math.sqrt(style_dim)
    wlinT = (params["w_lin"] * lscale).T.astype(bf)
    z = jnp.dot(style.astype(bf), wlinT,
                preferred_element_type=jnp.float32) + params["b_lin"]
    z = jnp.where(z >= 0, z, 0.2 * z) * math.sqrt(2.0)
    sm = z.reshape(B, Cin, SD2, SD2)
    sm = jnp.repeat(jnp.repeat(sm, 2, axis=2), 2, axis=3)     # nearest x2

    def conv3(inp, w, b):
        o = lax.conv_general_dilated(
            inp.astype(bf), (w * cscale).astype(bf), (1, 1), [(1, 1), (1, 1)],
            dimension_numbers=dn, preferred_element_type=jnp.float32)
        return o + b[None, :, None, None]

    sw = conv3(sm, params["w_mod_w"], params["b_mod_w"])
    sb = conv3(sm, params["w_mod_b"], params["b_mod_b"])
    ri = (jnp.arange(H) * SD) // H
    rj = (jnp.arange(W) * SD) // W
    sw = sw[:, :, ri][:, :, :, rj]
    sb = sb[:, :, ri][:, :, :, rj]
    return out * (1 + 0.3 * sw) + 0.3 * sb


# ----------------------------------------------------------------------------
if __name__ == "__main__":
    B, Cin, Cout = 2, 4, 8
    H = W = 16
    style_dim, spatial_dim = 32, 8
    SD2SQ = (spatial_dim // 2) ** 2

    key = jax.random.PRNGKey(0)
    ks = jax.random.split(key, 9)
    x = jax.random.normal(ks[0], (B, Cin, H, W), jnp.float32)
    style = jax.random.normal(ks[1], (B, style_dim), jnp.float32)

    params = {
        # modulated-conv weight (1, out, in, k, k); no bias in the main conv
        "weight":  jax.random.normal(ks[2], (1, Cout, Cin, 3, 3), jnp.float32),
        # EqualLinear(style_dim -> Cin * (spatial_dim/2)^2), bias_init = 1
        "w_lin":   jax.random.normal(ks[3], (Cin * SD2SQ, style_dim), jnp.float32),
        "b_lin":   1.0 + 0.1 * jax.random.normal(ks[4], (Cin * SD2SQ,), jnp.float32),
        # spatial_modulation_w / _b: EqualConv2d(Cin, Cout, 3, pad=1) with bias
        "w_mod_w": jax.random.normal(ks[5], (Cout, Cin, 3, 3), jnp.float32),
        "b_mod_w": 0.1 * jax.random.normal(ks[6], (Cout,), jnp.float32),
        "w_mod_b": jax.random.normal(ks[7], (Cout, Cin, 3, 3), jnp.float32),
        "b_mod_b": 0.1 * jax.random.normal(ks[8], (Cout,), jnp.float32),
    }

    out = jax.block_until_ready(spatial_modulated_conv2d(x, style, params, spatial_dim))
    ref = jax.block_until_ready(reference_forward(x, style, params, spatial_dim))

    assert out.shape == (B, Cout, H, W), out.shape
    max_err = float(jnp.max(jnp.abs(out - ref)))
    tol = 2e-3 * (float(jnp.max(jnp.abs(ref))) + 1.0)
    assert max_err < tol, f"max abs error {max_err} exceeds tol {tol}"

    print("KERNEL_OK")
</pallas_src>

<mosaic_0001>
module attributes {stable_mosaic.version = 11 : i64} {
  func.func @kernel(%arg0: i32, %arg1: memref<1x4x256xf32, #tpu.memory_space<vmem>>, %arg2: memref<1x1x32xf32, #tpu.memory_space<vmem>>, %arg3: memref<8x144xbf16, #tpu.memory_space<vmem>>, %arg4: memref<2x256xf32, #tpu.memory_space<vmem>>, %arg5: memref<32x64xbf16, #tpu.memory_space<vmem>>, %arg6: memref<1x64xf32, #tpu.memory_space<vmem>>, %arg7: memref<16x64xf32, #tpu.memory_space<vmem>>, %arg8: memref<64x82xbf16, #tpu.memory_space<vmem>>, %arg9: memref<16x144xbf16, #tpu.memory_space<vmem>>, %arg10: memref<16x1xf32, #tpu.memory_space<vmem>>, %arg11: memref<2x64xf32, #tpu.memory_space<vmem>>, %arg12: memref<64x256xf32, #tpu.memory_space<vmem>>, %arg13: memref<1x8x256xf32, #tpu.memory_space<vmem>>, %arg14: memref<16x290xf32, #tpu.memory_space<vmem>>, %arg15: memref<144x256xbf16, #tpu.memory_space<vmem>>, %arg16: memref<16x82xf32, #tpu.memory_space<vmem>>, %arg17: memref<144x64xbf16, #tpu.memory_space<vmem>>) attributes {dimension_semantics = [#tpu.dimension_semantics<parallel>], iteration_bounds = array<i64: 2>, scalar_prefetch = 0 : i64, scratch_operands = 4 : i64, tpu.core_type = #tpu.core_type<tc>, window_params = [{transform_indices = @transform_0, window_bounds = array<i64: 1, 4, 256>}, {transform_indices = @transform_1, window_bounds = array<i64: 1, 1, 32>}, {pipeline_mode = #tpu.pipeline_mode<synchronous>, transform_indices = @transform_2, window_bounds = array<i64: 8, 144>}, {pipeline_mode = #tpu.pipeline_mode<synchronous>, transform_indices = @transform_3, window_bounds = array<i64: 2, 256>}, {pipeline_mode = #tpu.pipeline_mode<synchronous>, transform_indices = @transform_4, window_bounds = array<i64: 32, 64>}, {pipeline_mode = #tpu.pipeline_mode<synchronous>, transform_indices = @transform_5, window_bounds = array<i64: 1, 64>}, {pipeline_mode = #tpu.pipeline_mode<synchronous>, transform_indices = @transform_6, window_bounds = array<i64: 16, 64>}, {pipeline_mode = #tpu.pipeline_mode<synchronous>, transform_indices = @transform_7, window_bounds = array<i64: 64, 82>}, {pipeline_mode = #tpu.pipeline_mode<synchronous>, transform_indices = @transform_8, window_bounds = array<i64: 16, 144>}, {pipeline_mode = #tpu.pipeline_mode<synchronous>, transform_indices = @transform_9, window_bounds = array<i64: 16, 1>}, {pipeline_mode = #tpu.pipeline_mode<synchronous>, transform_indices = @transform_10, window_bounds = array<i64: 2, 64>}, {pipeline_mode = #tpu.pipeline_mode<synchronous>, transform_indices = @transform_11, window_bounds = array<i64: 64, 256>}, {transform_indices = @transform_12, window_bounds = array<i64: 1, 8, 256>}]} {
    %cst = arith.constant 0.000000e+00 : f32
    %0 = vector.broadcast %cst : f32 to vector<16x17xf32>
    %c0 = arith.constant 0 : index
    %c0_0 = arith.constant 0 : index
    %1 = vector.load %arg14[%c0, %c0_0] : memref<16x290xf32, #tpu.memory_space<vmem>>, vector<16x17xf32>
    tpu.vector_store %arg14[%c0, %c0_0], %0 {strides = array<i32>} : memref<16x290xf32, #tpu.memory_space<vmem>>, vector<16x17xf32>,
    %c0_1 = arith.constant 0 : index
    %c273 = arith.constant 273 : index
    %2 = vector.load %arg14[%c0_1, %c273] : memref<16x290xf32, #tpu.memory_space<vmem>>, vector<16x17xf32>
    tpu.vector_store %arg14[%c0_1, %c273], %0 {strides = array<i32>} : memref<16x290xf32, #tpu.memory_space<vmem>>, vector<16x17xf32>,
    %cst_2 = arith.constant 0.000000e+00 : f32
    %3 = vector.broadcast %cst_2 : f32 to vector<12x256xf32>
    %c4 = arith.constant 4 : index
    %c17 = arith.constant 17 : index
    %4 = vector.load %arg14[%c4, %c17] : memref<16x290xf32, #tpu.memory_space<vmem>>, vector<12x256xf32>
    tpu.vector_store %arg14[%c4, %c17], %3 {strides = array<i32>} : memref<16x290xf32, #tpu.memory_space<vmem>>, vector<12x256xf32>,
    %c0_3 = arith.constant 0 : index
    %c0_4 = arith.constant 0 : index
    %c0_5 = arith.constant 0 : index
    %5 = vector.load %arg1[%c0_3, %c0_4, %c0_5] : memref<1x4x256xf32, #tpu.memory_space<vmem>>, vector<1x4x256xf32>
    %6 = vector.shape_cast %5 : vector<1x4x256xf32> to vector<4x256xf32>
    %c0_6 = arith.constant 0 : index
    %c17_7 = arith.constant 17 : index
    %7 = vector.load %arg14[%c0_6, %c17_7] : memref<16x290xf32, #tpu.memory_space<vmem>>, vector<4x256xf32>
    tpu.vector_store %arg14[%c0_6, %c17_7], %6 {strides = array<i32>} : memref<16x290xf32, #tpu.memory_space<vmem>>, vector<4x256xf32>,
    %c0_8 = arith.constant 0 : index
    %c0_9 = arith.constant 0 : index
    %8 = vector.load %arg4[%c0_8, %c0_9] : memref<2x256xf32, #tpu.memory_space<vmem>>, vector<1x256xf32>
    %c1 = arith.constant 1 : index
    %c0_10 = arith.constant 0 : index
    %9 = vector.load %arg4[%c1, %c0_10] : memref<2x256xf32, #tpu.memory_space<vmem>>, vector<1x256xf32>
    %c0_11 = arith.constant 0 : index
    %c0_12 = arith.constant 0 : index
    %10 = vector.load %arg14[%c0_11, %c0_12] : memref<16x290xf32, #tpu.memory_space<vmem>>, vector<16x256xf32>
    %11 = vector.broadcast %8 : vector<1x256xf32> to vector<16x256xf32>
    %12 = arith.mulf %10, %11 : vector<16x256xf32>
    %13 = arith.truncf %12 : vector<16x256xf32> to vector<16x256xbf16>
    %c0_13 = arith.constant 0 : index
    %c0_14 = arith.constant 0 : index
    %14 = vector.load %arg15[%c0_13, %c0_14] : memref<144x256xbf16, #tpu.memory_space<vmem>>, vector<16x256xbf16>
    tpu.vector_store %arg15[%c0_13, %c0_14], %13 {strides = array<i32>} : memref<144x256xbf16, #tpu.memory_space<vmem>>, vector<16x256xbf16>,
    %c0_15 = arith.constant 0 : index
    %c1_16 = arith.constant 1 : index
    %15 = vector.load %arg14[%c0_15, %c1_16] : memref<16x290xf32, #tpu.memory_space<vmem>>, vector<16x256xf32>
    %16 = arith.truncf %15 : vector<16x256xf32> to vector<16x256xbf16>
    %c16 = arith.constant 16 : index
    %c0_17 = arith.constant 0 : index
    %17 = vector.load %arg15[%c16, %c0_17] : memref<144x256xbf16, #tpu.memory_space<vmem>>, vector<16x256xbf16>
    tpu.vector_store %arg15[%c16, %c0_17], %16 {strides = array<i32>} : memref<144x256xbf16, #tpu.memory_space<vmem>>, vector<16x256xbf16>,
    %c0_18 = arith.constant 0 : index
    %c2 = arith.constant 2 : index
    %18 = vector.load %arg14[%c0_18, %c2] : memref<16x290xf32, #tpu.memory_space<vmem>>, vector<16x256xf32>
    %19 = vector.broadcast %9 : vector<1x256xf32> to vector<16x256xf32>
    %20 = arith.mulf %18, %19 : vector<16x256xf32>
    %21 = arith.truncf %20 : vector<16x256xf32> to vector<16x256xbf16>
    %c32 = arith.constant 32 : index
    %c0_19 = arith.constant 0 : index
    %22 = vector.load %arg15[%c32, %c0_19] : memref<144x256xbf16, #tpu.memory_space<vmem>>, vector<16x256xbf16>
    tpu.vector_store %arg15[%c32, %c0_19], %21 {strides = array<i32>} : memref<144x256xbf16, #tpu.memory_space<vmem>>, vector<16x256xbf16>,
    %c0_20 = arith.constant 0 : index
    %c16_21 = arith.constant 16 : index
    %23 = vector.load %arg14[%c0_20, %c16_21] : memref<16x290xf32, #tpu.memory_space<vmem>>, vector<16x256xf32>
    %24 = vector.broadcast %8 : vector<1x256xf32> to vector<16x256xf32>
    %25 = arith.mulf %23, %24 : vector<16x256xf32>
    %26 = arith.truncf %25 : vector<16x256xf32> to vector<16x256xbf16>
    %c48 = arith.constant 48 : index
    %c0_22 = arith.constant 0 : index
    %27 = vector.load %arg15[%c48, %c0_22] : memref<144x256xbf16, #tpu.memory_space<vmem>>, vector<16x256xbf16>
    tpu.vector_store %arg15[%c48, %c0_22], %26 {strides = array<i32>} : memref<144x256xbf16, #tpu.memory_space<vmem>>, vector<16x256xbf16>,
    %c0_23 = arith.constant 0 : index
    %c17_24 = arith.constant 17 : index
    %28 = vector.load %arg14[%c0_23, %c17_24] : memref<16x290xf32, #tpu.memory_space<vmem>>, vector<16x256xf32>
    %29 = arith.truncf %28 : vector<16x256xf32> to vector<16x256xbf16>
    %c64 = arith.constant 64 : index
    %c0_25 = arith.constant 0 : index
    %30 = vector.load %arg15[%c64, %c0_25] : memref<144x256xbf16, #tpu.memory_space<vmem>>, vector<16x256xbf16>
    tpu.vector_store %arg15[%c64, %c0_25], %29 {strides = array<i32>} : memref<144x256xbf16, #tpu.memory_space<vmem>>, vector<16x256xbf16>,
    %c0_26 = arith.constant 0 : index
    %c18 = arith.constant 18 : index
    %31 = vector.load %arg14[%c0_26, %c18] : memref<16x290xf32, #tpu.memory_space<vmem>>, vector<16x256xf32>
    %32 = vector.broadcast %9 : vector<1x256xf32> to vector<16x256xf32>
    %33 = arith.mulf %31, %32 : vector<16x256xf32>
    %34 = arith.truncf %33 : vector<16x256xf32> to vector<16x256xbf16>
    %c80 = arith.constant 80 : index
    %c0_27 = arith.constant 0 : index
    %35 = vector.load %arg15[%c80, %c0_27] : memref<144x256xbf16, #tpu.memory_space<vmem>>, vector<16x256xbf16>
    tpu.vector_store %arg15[%c80, %c0_27], %34 {strides = array<i32>} : memref<144x256xbf16, #tpu.memory_space<vmem>>, vector<16x256xbf16>,
    %c0_28 = arith.constant 0 : index
    %c32_29 = arith.constant 32 : index
    %36 = vector.load %arg14[%c0_28, %c32_29] : memref<16x290xf32, #tpu.memory_space<vmem>>, vector<16x256xf32>
    %37 = vector.broadcast %8 : vector<1x256xf32> to vector<16x256xf32>
    %38 = arith.mulf %36, %37 : vector<16x256xf32>
    %39 = arith.truncf %38 : vector<16x256xf32> to vector<16x256xbf16>
    %c96 = arith.constant 96 : index
    %c0_30 = arith.constant 0 : index
    %40 = vector.load %arg15[%c96, %c0_30] : memref<144x256xbf16, #tpu.memory_space<vmem>>, vector<16x256xbf16>
    tpu.vector_store %arg15[%c96, %c0_30], %39 {strides = array<i32>} : memref<144x256xbf16, #tpu.memory_space<vmem>>, vector<16x256xbf16>,
    %c0_31 = arith.constant 0 : index
    %c33 = arith.constant 33 : index
    %41 = vector.load %arg14[%c0_31, %c33] : memref<16x290xf32, #tpu.memory_space<vmem>>, vector<16x256xf32>
    %42 = arith.truncf %41 : vector<16x256xf32> to vector<16x256xbf16>
    %c112 = arith.constant 112 : index
    %c0_32 = arith.constant 0 : index
    %43 = vector.load %arg15[%c112, %c0_32] : memref<144x256xbf16, #tpu.memory_space<vmem>>, vector<16x256xbf16>
    tpu.vector_store %arg15[%c112, %c0_32], %42 {strides = array<i32>} : memref<144x256xbf16, #tpu.memory_space<vmem>>, vector<16x256xbf16>,
    %c0_33 = arith.constant 0 : index
    %c34 = arith.constant 34 : index
    %44 = vector.load %arg14[%c0_33, %c34] : memref<16x290xf32, #tpu.memory_space<vmem>>, vector<16x256xf32>
    %45 = vector.broadcast %9 : vector<1x256xf32> to vector<16x256xf32>
    %46 = arith.mulf %44, %45 : vector<16x256xf32>
    %47 = arith.truncf %46 : vector<16x256xf32> to vector<16x256xbf16>
    %c128 = arith.constant 128 : index
    %c0_34 = arith.constant 0 : index
    %48 = vector.load %arg15[%c128, %c0_34] : memref<144x256xbf16, #tpu.memory_space<vmem>>, vector<16x256xbf16>
    tpu.vector_store %arg15[%c128, %c0_34], %47 {strides = array<i32>} : memref<144x256xbf16, #tpu.memory_space<vmem>>, vector<16x256xbf16>,
    %c0_35 = arith.constant 0 : index
    %c0_36 = arith.constant 0 : index
    %49 = vector.load %arg3[%c0_35, %c0_36] : memref<8x144xbf16, #tpu.memory_space<vmem>>, vector<8x144xbf16>
    %c0_37 = arith.constant 0 : index
    %c0_38 = arith.constant 0 : index
    %50 = vector.load %arg15[%c0_37, %c0_38] : memref<144x256xbf16, #tpu.memory_space<vmem>>, vector<144x256xbf16>
    %cst_39 = arith.constant dense<0.000000e+00> : vector<8x256xf32>
    %51 = tpu.matmul %49, %50, %cst_39 {dimension_numbers = #tpu.dot_dimension_numbers<[1], [0], [0], [1], [0, 0, 1, 1], [], []>} : vector<8x144xbf16>, vector<144x256xbf16>, vector<8x256xf32> -> vector<8x256xf32>
    %c0_40 = arith.constant 0 : index
    %c0_41 = arith.constant 0 : index
    %c0_42 = arith.constant 0 : index
    %52 = vector.load %arg2[%c0_40, %c0_41, %c0_42] : memref<1x1x32xf32, #tpu.memory_space<vmem>>, vector<1x1x32xf32>
    %53 = vector.shape_cast %52 : vector<1x1x32xf32> to vector<1x32xf32>
    %54 = arith.truncf %53 : vector<1x32xf32> to vector<1x32xbf16>
    %c0_43 = arith.constant 0 : index
    %c0_44 = arith.constant 0 : index
    %55 = vector.load %arg5[%c0_43, %c0_44] : memref<32x64xbf16, #tpu.memory_space<vmem>>, vector<32x64xbf16>
    %cst_45 = arith.constant dense<0.000000e+00> : vector<1x64xf32>
    %56 = tpu.matmul %54, %55, %cst_45 {dimension_numbers = #tpu.dot_dimension_numbers<[1], [0], [0], [1], [0, 0, 1, 1], [], []>} : vector<1x32xbf16>, vector<32x64xbf16>, vector<1x64xf32> -> vector<1x64xf32>
    %c0_46 = arith.constant 0 : index
    %c0_47 = arith.constant 0 : index
    %57 = vector.load %arg6[%c0_46, %c0_47] : memref<1x64xf32, #tpu.memory_space<vmem>>, vector<1x64xf32>
    %58 = arith.addf %56, %57 : vector<1x64xf32>
    %cst_48 = arith.constant 0.000000e+00 : f32
    %59 = vector.broadcast %cst_48 : f32 to vector<1x64xf32>
    %60 = arith.cmpf oge, %58, %59 : vector<1x64xf32>
    %cst_49 = arith.constant 2.000000e-01 : f32
    %61 = vector.broadcast %cst_49 : f32 to vector<1x64xf32>
    %62 = arith.mulf %61, %58 : vector<1x64xf32>
    %63 = arith.select %60, %58, %62 : vector<1x64xi1>, vector<1x64xf32>
    %cst_50 = arith.constant 1.41421354 : f32
    %64 = vector.broadcast %cst_50 : f32 to vector<1x64xf32>
    %65 = arith.mulf %63, %64 : vector<1x64xf32>
    %66 = vector.shape_cast %65 : vector<1x64xf32> to vector<1x1x64xf32>
    %c0_51 = arith.constant 0 : index
    %c0_52 = arith.constant 0 : index
    %67 = vector.load %arg7[%c0_51, %c0_52] : memref<16x64xf32, #tpu.memory_space<vmem>>, vector<16x64xf32>
    %68 = vector.shape_cast %67 : vector<16x64xf32> to vector<1x16x64xf32>
    %69 = vector.broadcast %66 : vector<1x1x64xf32> to vector<1x16x64xf32>
    %70 = arith.mulf %69, %68 : vector<1x16x64xf32>
    %71 = vector.shape_cast %70 : vector<1x16x64xf32> to vector<16x64xf32>
    %72 = arith.truncf %71 : vector<16x64xf32> to vector<16x64xbf16>
    %c0_53 = arith.constant 0 : index
    %c0_54 = arith.constant 0 : index
    %73 = vector.load %arg8[%c0_53, %c0_54] : memref<64x82xbf16, #tpu.memory_space<vmem>>, vector<64x82xbf16>
    %cst_55 = arith.constant dense<0.000000e+00> : vector<16x82xf32>
    %74 = tpu.matmul %72, %73, %cst_55 {dimension_numbers = #tpu.dot_dimension_numbers<[1], [0], [0], [1], [0, 0, 1, 1], [], []>} : vector<16x64xbf16>, vector<64x82xbf16>, vector<16x82xf32> -> vector<16x82xf32>
    %c0_56 = arith.constant 0 : index
    %c0_57 = arith.constant 0 : index
    %75 = vector.load %arg16[%c0_56, %c0_57] : memref<16x82xf32, #tpu.memory_space<vmem>>, vector<16x82xf32>
    tpu.vector_store %arg16[%c0_56, %c0_57], %74 {strides = array<i32>} : memref<16x82xf32, #tpu.memory_space<vmem>>, vector<16x82xf32>,
    %c0_58 = arith.constant 0 : index
    %c0_59 = arith.constant 0 : index
    %76 = vector.load %arg11[%c0_58, %c0_59] : memref<2x64xf32, #tpu.memory_space<vmem>>, vector<1x64xf32>
    %c1_60 = arith.constant 1 : index
    %c0_61 = arith.constant 0 : index
    %77 = vector.load %arg11[%c1_60, %c0_61] : memref<2x64xf32, #tpu.memory_space<vmem>>, vector<1x64xf32>
    %c0_62 = arith.constant 0 : index
    %c0_63 = arith.constant 0 : index
    %78 = vector.load %arg16[%c0_62, %c0_63] : memref<16x82xf32, #tpu.memory_space<vmem>>, vector<16x64xf32>
    %79 = vector.broadcast %76 : vector<1x64xf32> to vector<16x64xf32>
    %80 = arith.mulf %78, %79 : vector<16x64xf32>
    %81 = arith.truncf %80 : vector<16x64xf32> to vector<16x64xbf16>
    %c0_64 = arith.constant 0 : index
    %c0_65 = arith.constant 0 : index
    %82 = vector.load %arg17[%c0_64, %c0_65] : memref<144x64xbf16, #tpu.memory_space<vmem>>, vector<16x64xbf16>
    tpu.vector_store %arg17[%c0_64, %c0_65], %81 {strides = array<i32>} : memref<144x64xbf16, #tpu.memory_space<vmem>>, vector<16x64xbf16>,
    %c0_66 = arith.constant 0 : index
    %c1_67 = arith.constant 1 : index
    %83 = vector.load %arg16[%c0_66, %c1_67] : memref<16x82xf32, #tpu.memory_space<vmem>>, vector<16x64xf32>
    %84 = arith.truncf %83 : vector<16x64xf32> to vector<16x64xbf16>
    %c16_68 = arith.constant 16 : index
    %c0_69 = arith.constant 0 : index
    %85 = vector.load %arg17[%c16_68, %c0_69] : memref<144x64xbf16, #tpu.memory_space<vmem>>, vector<16x64xbf16>
    tpu.vector_store %arg17[%c16_68, %c0_69], %84 {strides = array<i32>} : memref<144x64xbf16, #tpu.memory_space<vmem>>, vector<16x64xbf16>,
    %c0_70 = arith.constant 0 : index
    %c2_71 = arith.constant 2 : index
    %86 = vector.load %arg16[%c0_70, %c2_71] : memref<16x82xf32, #tpu.memory_space<vmem>>, vector<16x64xf32>
    %87 = vector.broadcast %77 : vector<1x64xf32> to vector<16x64xf32>
    %88 = arith.mulf %86, %87 : vector<16x64xf32>
    %89 = arith.truncf %88 : vector<16x64xf32> to vector<16x64xbf16>
    %c32_72 = arith.constant 32 : index
    %c0_73 = arith.constant 0 : index
    %90 = vector.load %arg17[%c32_72, %c0_73] : memref<144x64xbf16, #tpu.memory_space<vmem>>, vector<16x64xbf16>
    tpu.vector_store %arg17[%c32_72, %c0_73], %89 {strides = array<i32>} : memref<144x64xbf16, #tpu.memory_space<vmem>>, vector<16x64xbf16>,
    %c0_74 = arith.constant 0 : index
    %c8 = arith.constant 8 : index
    %91 = vector.load %arg16[%c0_74, %c8] : memref<16x82xf32, #tpu.memory_space<vmem>>, vector<16x64xf32>
    %92 = vector.broadcast %76 : vector<1x64xf32> to vector<16x64xf32>
    %93 = arith.mulf %91, %92 : vector<16x64xf32>
    %94 = arith.truncf %93 : vector<16x64xf32> to vector<16x64xbf16>
    %c48_75 = arith.constant 48 : index
    %c0_76 = arith.constant 0 : index
    %95 = vector.load %arg17[%c48_75, %c0_76] : memref<144x64xbf16, #tpu.memory_space<vmem>>, vector<16x64xbf16>
    tpu.vector_store %arg17[%c48_75, %c0_76], %94 {strides = array<i32>} : memref<144x64xbf16, #tpu.memory_space<vmem>>, vector<16x64xbf16>,
    %c0_77 = arith.constant 0 : index
    %c9 = arith.constant 9 : index
    %96 = vector.load %arg16[%c0_77, %c9] : memref<16x82xf32, #tpu.memory_space<vmem>>, vector<16x64xf32>
    %97 = arith.truncf %96 : vector<16x64xf32> to vector<16x64xbf16>
    %c64_78 = arith.constant 64 : index
    %c0_79 = arith.constant 0 : index
    %98 = vector.load %arg17[%c64_78, %c0_79] : memref<144x64xbf16, #tpu.memory_space<vmem>>, vector<16x64xbf16>
    tpu.vector_store %arg17[%c64_78, %c0_79], %97 {strides = array<i32>} : memref<144x64xbf16, #tpu.memory_space<vmem>>, vector<16x64xbf16>,
    %c0_80 = arith.constant 0 : index
    %c10 = arith.constant 10 : index
    %99 = vector.load %arg16[%c0_80, %c10] : memref<16x82xf32, #tpu.memory_space<vmem>>, vector<16x64xf32>
    %100 = vector.broadcast %77 : vector<1x64xf32> to vector<16x64xf32>
    %101 = arith.mulf %99, %100 : vector<16x64xf32>
    %102 = arith.truncf %101 : vector<16x64xf32> to vector<16x64xbf16>
    %c80_81 = arith.constant 80 : index
    %c0_82 = arith.constant 0 : index
    %103 = vector.load %arg17[%c80_81, %c0_82] : memref<144x64xbf16, #tpu.memory_space<vmem>>, vector<16x64xbf16>
    tpu.vector_store %arg17[%c80_81, %c0_82], %102 {strides = array<i32>} : memref<144x64xbf16, #tpu.memory_space<vmem>>, vector<16x64xbf16>,
    %c0_83 = arith.constant 0 : index
    %c16_84 = arith.constant 16 : index
    %104 = vector.load %arg16[%c0_83, %c16_84] : memref<16x82xf32, #tpu.memory_space<vmem>>, vector<16x64xf32>
    %105 = vector.broadcast %76 : vector<1x64xf32> to vector<16x64xf32>
    %106 = arith.mulf %104, %105 : vector<16x64xf32>
    %107 = arith.truncf %106 : vector<16x64xf32> to vector<16x64xbf16>
    %c96_85 = arith.constant 96 : index
    %c0_86 = arith.constant 0 : index
    %108 = vector.load %arg17[%c96_85, %c0_86] : memref<144x64xbf16, #tpu.memory_space<vmem>>, vector<16x64xbf16>
    tpu.vector_store %arg17[%c96_85, %c0_86], %107 {strides = array<i32>} : memref<144x64xbf16, #tpu.memory_space<vmem>>, vector<16x64xbf16>,
    %c0_87 = arith.constant 0 : index
    %c17_88 = arith.constant 17 : index
    %109 = vector.load %arg16[%c0_87, %c17_88] : memref<16x82xf32, #tpu.memory_space<vmem>>, vector<16x64xf32>
    %110 = arith.truncf %109 : vector<16x64xf32> to vector<16x64xbf16>
    %c112_89 = arith.constant 112 : index
    %c0_90 = arith.constant 0 : index
    %111 = vector.load %arg17[%c112_89, %c0_90] : memref<144x64xbf16, #tpu.memory_space<vmem>>, vector<16x64xbf16>
    tpu.vector_store %arg17[%c112_89, %c0_90], %110 {strides = array<i32>} : memref<144x64xbf16, #tpu.memory_space<vmem>>, vector<16x64xbf16>,
    %c0_91 = arith.constant 0 : index
    %c18_92 = arith.constant 18 : index
    %112 = vector.load %arg16[%c0_91, %c18_92] : memref<16x82xf32, #tpu.memory_space<vmem>>, vector<16x64xf32>
    %113 = vector.broadcast %77 : vector<1x64xf32> to vector<16x64xf32>
    %114 = arith.mulf %112, %113 : vector<16x64xf32>
    %115 = arith.truncf %114 : vector<16x64xf32> to vector<16x64xbf16>
    %c128_93 = arith.constant 128 : index
    %c0_94 = arith.constant 0 : index
    %116 = vector.load %arg17[%c128_93, %c0_94] : memref<144x64xbf16, #tpu.memory_space<vmem>>, vector<16x64xbf16>
    tpu.vector_store %arg17[%c128_93, %c0_94], %115 {strides = array<i32>} : memref<144x64xbf16, #tpu.memory_space<vmem>>, vector<16x64xbf16>,
    %c0_95 = arith.constant 0 : index
    %c0_96 = arith.constant 0 : index
    %117 = vector.load %arg9[%c0_95, %c0_96] : memref<16x144xbf16, #tpu.memory_space<vmem>>, vector<16x144xbf16>
    %c0_97 = arith.constant 0 : index
    %c0_98 = arith.constant 0 : index
    %118 = vector.load %arg17[%c0_97, %c0_98] : memref<144x64xbf16, #tpu.memory_space<vmem>>, vector<144x64xbf16>
    %cst_99 = arith.constant dense<0.000000e+00> : vector<16x64xf32>
    %119 = tpu.matmul %117, %118, %cst_99 {dimension_numbers = #tpu.dot_dimension_numbers<[1], [0], [0], [1], [0, 0, 1, 1], [], []>} : vector<16x144xbf16>, vector<144x64xbf16>, vector<16x64xf32> -> vector<16x64xf32>
    %c0_100 = arith.constant 0 : index
    %c0_101 = arith.constant 0 : index
    %120 = vector.load %arg10[%c0_100, %c0_101] : memref<16x1xf32, #tpu.memory_space<vmem>>, vector<16x1xf32>
    %121 = vector.broadcast %120 : vector<16x1xf32> to vector<16x64xf32>
    %122 = arith.addf %119, %121 : vector<16x64xf32>
    %cst_102 = arith.constant dense<0.000000e+00> : vector<8xf32>
    %123 = vector.multi_reduction <add>, %51, %cst_102 [1] : vector<8x256xf32> to vector<8xf32>
    %124 = vector.shape_cast %123 : vector<8xf32> to vector<8x1xf32>
    %cst_103 = arith.constant 3.906250e-03 : f32
    %125 = vector.broadcast %cst_103 : f32 to vector<8x1xf32>
    %126 = arith.mulf %124, %125 : vector<8x1xf32>
    %127 = arith.mulf %51, %51 : vector<8x256xf32>
    %cst_104 = arith.constant dense<0.000000e+00> : vector<8xf32>
    %128 = vector.multi_reduction <add>, %127, %cst_104 [1] : vector<8x256xf32> to vector<8xf32>
    %129 = vector.shape_cast %128 : vector<8xf32> to vector<8x1xf32>
    %cst_105 = arith.constant 3.906250e-03 : f32
    %130 = vector.broadcast %cst_105 : f32 to vector<8x1xf32>
    %131 = arith.mulf %129, %130 : vector<8x1xf32>
    %132 = arith.mulf %126, %126 : vector<8x1xf32>
    %133 = arith.subf %131, %132 : vector<8x1xf32>
    %cst_106 = arith.constant 0.000000e+00 : f32
    %134 = vector.broadcast %cst_106 : f32 to vector<8x1xf32>
    %135 = arith.maximumf %133, %134 : vector<8x1xf32>
    %136 = vector.broadcast %126 : vector<8x1xf32> to vector<8x256xf32>
    %137 = arith.subf %51, %136 : vector<8x256xf32>
    %cst_107 = arith.constant 9.99999974E-6 : f32
    %138 = vector.broadcast %cst_107 : f32 to vector<8x1xf32>
    %139 = arith.addf %135, %138 : vector<8x1xf32>
    %140 = math.rsqrt %139 : vector<8x1xf32>
    %141 = vector.broadcast %140 : vector<8x1xf32> to vector<8x256xf32>
    %142 = arith.mulf %137, %141 : vector<8x256xf32>
    %c0_108 = arith.constant 0 : index
    %c0_109 = arith.constant 0 : index
    %143 = vector.load %arg12[%c0_108, %c0_109] : memref<64x256xf32, #tpu.memory_space<vmem>>, vector<64x256xf32>
    %cst_110 = arith.constant dense<0.000000e+00> : vector<16x256xf32>
    %144 = tpu.matmul %122, %143, %cst_110 {dimension_numbers = #tpu.dot_dimension_numbers<[1], [0], [0], [1], [0, 0, 1, 1], [], []>} : vector<16x64xf32>, vector<64x256xf32>, vector<16x256xf32> -> vector<16x256xf32>
    %145 = vector.extract_strided_slice %144 {offsets = [0, 0], sizes = [8, 256], strides = [1, 1]} : vector<16x256xf32> to vector<8x256xf32>
    %146 = vector.extract_strided_slice %144 {offsets = [8, 0], sizes = [8, 256], strides = [1, 1]} : vector<16x256xf32> to vector<8x256xf32>
    %cst_111 = arith.constant 3.000000e-01 : f32
    %147 = vector.broadcast %cst_111 : f32 to vector<8x256xf32>
    %148 = arith.mulf %147, %145 : vector<8x256xf32>
    %cst_112 = arith.constant 1.000000e+00 : f32
    %149 = vector.broadcast %cst_112 : f32 to vector<8x256xf32>
    %150 = arith.addf %149, %148 : vector<8x256xf32>
    %151 = arith.mulf %142, %150 : vector<8x256xf32>
    %cst_113 = arith.constant 3.000000e-01 : f32
    %152 = vector.broadcast %cst_113 : f32 to vector<8x256xf32>
    %153 = arith.mulf %152, %146 : vector<8x256xf32>
    %154 = arith.addf %151, %153 : vector<8x256xf32>
    %c0_114 = arith.constant 0 : index
    %c0_115 = arith.constant 0 : index
    %c0_116 = arith.constant 0 : index
    %155 = vector.load %arg13[%c0_114, %c0_115, %c0_116] : memref<1x8x256xf32, #tpu.memory_space<vmem>>, vector<1x8x256xf32>
    %156 = vector.shape_cast %155 : vector<1x8x256xf32> to vector<8x256xf32>
    %157 = vector.shape_cast %154 : vector<8x256xf32> to vector<1x8x256xf32>
    tpu.vector_store %arg13[%c0_114, %c0_115, %c0_116], %157 {strides = array<i32>} : memref<1x8x256xf32, #tpu.memory_space<vmem>>, vector<1x8x256xf32>,
    return
  }
  func.func @transform_0(%arg0: i32) -> (i32, i32, i32) {
    %c0_i32 = arith.constant 0 : i32
    %c0_i32_0 = arith.constant 0 : i32
    %c0_i32_1 = arith.constant 0 : i32
    return %arg0, %c0_i32, %c0_i32_0 : i32, i32, i32
  }
  func.func @transform_1(%arg0: i32) -> (i32, i32, i32) {
    %c0_i32 = arith.constant 0 : i32
    %c0_i32_0 = arith.constant 0 : i32
    %c0_i32_1 = arith.constant 0 : i32
    return %arg0, %c0_i32, %c0_i32_0 : i32, i32, i32
  }
  func.func @transform_2(%arg0: i32) -> (i32, i32) {
    %c0_i32 = arith.constant 0 : i32
    %c0_i32_0 = arith.constant 0 : i32
    %c0_i32_1 = arith.constant 0 : i32
    return %c0_i32, %c0_i32_0 : i32, i32
  }
  func.func @transform_3(%arg0: i32) -> (i32, i32) {
    %c0_i32 = arith.constant 0 : i32
    %c0_i32_0 = arith.constant 0 : i32
    %c0_i32_1 = arith.constant 0 : i32
    return %c0_i32, %c0_i32_0 : i32, i32
  }
  func.func @transform_4(%arg0: i32) -> (i32, i32) {
    %c0_i32 = arith.constant 0 : i32
    %c0_i32_0 = arith.constant 0 : i32
    %c0_i32_1 = arith.constant 0 : i32
    return %c0_i32, %c0_i32_0 : i32, i32
  }
  func.func @transform_5(%arg0: i32) -> (i32, i32) {
    %c0_i32 = arith.constant 0 : i32
    %c0_i32_0 = arith.constant 0 : i32
    %c0_i32_1 = arith.constant 0 : i32
    return %c0_i32, %c0_i32_0 : i32, i32
  }
  func.func @transform_6(%arg0: i32) -> (i32, i32) {
    %c0_i32 = arith.constant 0 : i32
    %c0_i32_0 = arith.constant 0 : i32
    %c0_i32_1 = arith.constant 0 : i32
    return %c0_i32, %c0_i32_0 : i32, i32
  }
  func.func @transform_7(%arg0: i32) -> (i32, i32) {
    %c0_i32 = arith.constant 0 : i32
    %c0_i32_0 = arith.constant 0 : i32
    %c0_i32_1 = arith.constant 0 : i32
    return %c0_i32, %c0_i32_0 : i32, i32
  }
  func.func @transform_8(%arg0: i32) -> (i32, i32) {
    %c0_i32 = arith.constant 0 : i32
    %c0_i32_0 = arith.constant 0 : i32
    %c0_i32_1 = arith.constant 0 : i32
    return %c0_i32, %c0_i32_0 : i32, i32
  }
  func.func @transform_9(%arg0: i32) -> (i32, i32) {
    %c0_i32 = arith.constant 0 : i32
    %c0_i32_0 = arith.constant 0 : i32
    %c0_i32_1 = arith.constant 0 : i32
    return %c0_i32, %c0_i32_0 : i32, i32
  }
  func.func @transform_10(%arg0: i32) -> (i32, i32) {
    %c0_i32 = arith.constant 0 : i32
    %c0_i32_0 = arith.constant 0 : i32
    %c0_i32_1 = arith.constant 0 : i32
    return %c0_i32, %c0_i32_0 : i32, i32
  }
  func.func @transform_11(%arg0: i32) -> (i32, i32) {
    %c0_i32 = arith.constant 0 : i32
    %c0_i32_0 = arith.constant 0 : i32
    %c0_i32_1 = arith.constant 0 : i32
    return %c0_i32, %c0_i32_0 : i32, i32
  }
  func.func @transform_12(%arg0: i32) -> (i32, i32, i32) {
    %c0_i32 = arith.constant 0 : i32
    %c0_i32_0 = arith.constant 0 : i32
    %c0_i32_1 = arith.constant 0 : i32
    return %arg0, %c0_i32, %c0_i32_0 : i32, i32, i32
  }
}

</mosaic_0001>

<bundles_post_ra>
// kernel: tpu_custom_call.1
= control target key start
LH: loop header
LB: loop body
LE: loop exit
PB: predicated region body
PF: predicated region fallthrough
CT: control target
= control target key end

     0   :  { %s2617_s0 = inlined_call_operand.hbm [shape: f32[2,4,256], index: 0, kind: input, shape index: {}]   ;;  %s2618_s1 = inlined_call_operand.vmem [shape: f32[2,1,32], index: 1, kind: input, shape index: {}]   ;;  %s2619_s2 = inlined_call_operand.vmem [shape: bf16[8,144], index: 2, kind: input, shape index: {}]   ;;  %s2620_s3 = inlined_call_operand.hbm [shape: f32[2,256], index: 3, kind: input, shape index: {}]   ;;  %s2621_s4 = inlined_call_operand.hbm [shape: bf16[32,64], index: 4, kind: input, shape index: {}]   ;;  %s2622_s5 = inlined_call_operand.vmem [shape: f32[1,64], index: 5, kind: input, shape index: {}]   ;;  %s2623_s6 = inlined_call_operand.hbm [shape: f32[16,64], index: 6, kind: input, shape index: {}]   ;;  %s2624_s7 = inlined_call_operand.vmem [shape: bf16[64,82], index: 7, kind: input, shape index: {}]   ;;  %s2625_s8 = inlined_call_operand.hbm [shape: bf16[16,144], index: 8, kind: input, shape index: {}]   ;;  %s2626_s9 = inlined_call_operand.vmem [shape: f32[16,1], index: 9, kind: input, shape index: {}]   ;;  %s2627_s10 = inlined_call_operand.vmem [shape: f32[2,64], index: 10, kind: input, shape index: {}]   ;;  %s2628_s11 = inlined_call_operand.hbm [shape: f32[64,256], index: 11, kind: input, shape index: {}]   ;;  %s2629_s12 = inlined_call_operand.hbm [shape: f32[2,8,256], index: 12, kind: output, shape index: {}]  }
   0x1   :  { %2637 = sst [smem:[#allocation23_spill]] %s2619_s2 }
   0x2   :  { %2638 = sst [smem:[#allocation24_spill]] %s2620_s3 }
   0x3   :  { %2639 = sst [smem:[#allocation25_spill]] %s2622_s5 }
   0x4   :  { %2640 = sst [smem:[#allocation26_spill]] %s2623_s6 }
   0x5   :  { %2641 = sst [smem:[#allocation27_spill]] %s2626_s9 }
   0x6   :  { %2642 = sst [smem:[#allocation28_spill]] %s2629_s12 }
   0x7   :  { %17 = vsyncpa [#allocation7], 0 }
   0x8   :  { %19 = vsyncpa [#allocation7 + $0x1], 0 }
   0x9   :  { %20 = vsyncpa [#allocation10], 0 }
   0xa   :  { %21 = vsyncpa [#allocation13], 0 }
   0xb   :  { %22 = vsyncpa [#allocation16], 0 }
   0xc   :  { %23 = vsyncpa [#allocation8], 0 }
   0xd   :  { %25 = vsyncpa [#allocation8 + $0x1], 0  ;;  %s2115_s21 = smov 0   ;;  %s2117_s22 = smov 0  }
   0xe   :  { %s2119_s23 = smov 0   ;;  %s2121_s24 = smov 0  }
   0xf LB: > { %s2015_s25 = smov [#allocation9]   ;;  %s2136_s27 = sadd.s32 4294967295, %s2013_s24   ;;  %s2013_s24 = sphi %s2121_s24, %s2672_s24   ;;  %s2009_s23 = sphi %s2119_s23, %s2671_s23   ;;  %s2005_s22 = sphi %s2117_s22, %s2670_s22   ;;  %s2001_s21 = sphi %s2115_s21, %s2669_s21  }
  0x10   : > { %s340_s26 = sshll.u32 %s2015_s25, 4  ;;  %p1537_p0 = scmp.ge.s32.totalorder %s2013_s24, 1  ;;  %s341_s26 = int_to_ptr.vmem [resolvable:$true] %s340_s26 }
  0x11   : > { %p2630_p1 = scmp.eq.s32.totalorder %s2136_s27, 0  ;;  %p324_p2 = scmp.lt.s32.totalorder %s2013_s24, 3 }
  0x12   : > { %s2016_s29 = smov [#allocation12]   ;;  %s2017_s14 = smov [#allocation11]  }
  0x13   : > { %p2141_p3 = pnand %p1537_p0, %p324_p2  ;;  %s366_s30 = sshll.u32 %s2016_s29, 4  ;;  %s2148_s30 = int_to_ptr.vmem [resolvable:$true] %s366_s30 }
  0x14   : > { %s350_s15 = sshll.u32 %s2017_s14, 4  ;;  %s2645_s3 = sld [smem:[#allocation24_spill]]  ;;  %s2156_s15 = int_to_ptr.vmem [resolvable:$true] %s350_s15 }
  0x15   : > { %s2643_s28 = scalar_select %p2141_p3, 1, 0 }
  0x16   : > { %p1648_p5 = pneg %p2141_p3 }
  0x18   : > { %p2152_p6 = pnand %p1648_p5, %p2630_p1 }
  0x1a   : > { %s1765_s18 = scalar_lea.hbm %s2645_s3, 64  ;;  %p2166_p8 = pneg %p2152_p6 }
  0x1b   : > { %p1766_p7 = scmp.ne.s32.totalorder %s2645_s3, %s1765_s18  ;;  %p1772_p11 = scmp.lt.u32.totalorder %s1765_s18, %s2645_s3 }
  0x1d   : > { %p1768_p9 = pnand %p2166_p8, %p1766_p7 }
  0x1f   : > { %p1769_p10 = pneg %p1768_p9 }
  0x21   : > { %p1774_p12 = pnand %p1772_p11, %p1769_p10 }
  0x23   : > { %1777 = shalt.err (!%p1774_p12)
}
  0x24   : > { %s1778_s16 = scalar_lea.vmem %s341_s26, 64  ;;  %p1786_p5 = scmp.lt.s32.totalorder %s341_s26, %s341_s26 }
  0x25   : > { %p1779_p13 = scmp.ne.s32.totalorder %s341_s26, %s1778_s16  ;;  %p1787_p4 = scmp.lt.s32.totalorder %s1778_s16, %s1778_s16 }
  0x27   : > { %p1781_p0 = pnand %p1779_p13, %p2166_p8  ;;  %p1788_p1 = por %p1787_p4, %p1786_p5 }
  0x29   : > { %p1782_p2 = pneg %p1781_p0 }
  0x2b   : > { %p1789_p3 = pnand %p1788_p1, %p1782_p2 }
  0x2d   : > { %1792 = shalt.err (!%p1789_p3)
}
  0x2e   : > { %1651 = dma.hbm_to_vmem [thread:$0]  (!%p2152_p6), %s2645_s3, 64, %s341_s26, [#allocation10]  }
  0x2f   : > { %s2647_s6 = sld [smem:[#allocation26_spill]] }
  0x35   : > { %s1793_s29 = scalar_lea.hbm %s2647_s6, 256 }
  0x36   : > { %p1794_p7 = scmp.ne.s32.totalorder %s2647_s6, %s1793_s29  ;;  %p1800_p1 = scmp.lt.u32.totalorder %s1793_s29, %s2647_s6 }
  0x38   : > { %p1796_p9 = pnand %p1794_p7, %p2166_p8 }
  0x3a   : > { %p1797_p4 = pneg %p1796_p9 }
  0x3c   : > { %p1802_p3 = pnand %p1800_p1, %p1797_p4 }
  0x3e   : > { %1805 = shalt.err (!%p1802_p3)
}
  0x3f   : > { %s1806_s26 = scalar_lea.vmem %s2148_s30, 256  ;;  %p1814_p13 = scmp.lt.s32.totalorder %s2148_s30, %s2148_s30 }
  0x40   : > { %p1807_p10 = scmp.ne.s32.totalorder %s2148_s30, %s1806_s26  ;;  %p1815_p0 = scmp.lt.s32.totalorder %s1806_s26, %s1806_s26 }
  0x42   : > { %p1809_p11 = pnand %p1807_p10, %p2166_p8  ;;  %p1816_p2 = por %p1815_p0, %p1814_p13 }
  0x44   : > { %p1810_p12 = pneg %p1809_p11 }
  0x46   : > { %p1817_p5 = pnand %p1816_p2, %p1810_p12 }
  0x48   : > { %1820 = shalt.err (!%p1817_p5)
}
  0x49   : > { %s2634_s12 = smov 128   ;;  %s2635_s9 = smov 8  }
  0x4a   : > { %1657 = dma.hbm_to_vmem [thread:$0]  (!%p2152_p6), %s2647_s6, 256, %s2148_s30, [#allocation13], %s2634_s12, %s2634_s12, %s2635_s9  }
  0x4b   : > { %s1821_s29 = scalar_lea.hbm %s2621_s4, 256 }
  0x4c   : > { %p1822_p7 = scmp.ne.s32.totalorder %s2621_s4, %s1821_s29  ;;  %p1828_p1 = scmp.lt.u32.totalorder %s1821_s29, %s2621_s4 }
  0x4e   : > { %p1824_p9 = pnand %p1822_p7, %p2166_p8 }
  0x50   : > { %p1825_p4 = pneg %p1824_p9 }
  0x52   : > { %p1830_p3 = pnand %p1828_p1, %p1825_p4 }
  0x54   : > { %1833 = shalt.err (!%p1830_p3)
}
  0x55   : > { %s1834_s30 = scalar_lea.vmem %s2156_s15, 256  ;;  %p1842_p13 = scmp.lt.s32.totalorder %s2156_s15, %s2156_s15 }
  0x56   : > { %p1835_p10 = scmp.ne.s32.totalorder %s2156_s15, %s1834_s30  ;;  %p1843_p0 = scmp.lt.s32.totalorder %s1834_s30, %s1834_s30 }
  0x58   : > { %p1837_p11 = pnand %p1835_p10, %p2166_p8  ;;  %p1844_p2 = por %p1843_p0, %p1842_p13 }
  0x5a   : > { %p1838_p12 = pneg %p1837_p11 }
  0x5c   : > { %p1845_p5 = pnand %p1844_p2, %p1838_p12 }
  0x5e   : > { %1848 = shalt.err (!%p1845_p5)
}
  0x5f   : > { %s2020_s17 = smov 64   ;;  %s2021_s3 = smov 4  }
  0x60   : > { %1654 = dma.hbm_to_vmem [thread:$0]  (!%p2152_p6), %s2621_s4, 256, %s2156_s15, [#allocation10], %s2020_s17, %s2020_s17, %s2021_s3  }
  0x61   : > { %s2022_s20 = smov [#allocation14]   ;;  %s2023_s14 = smov [#allocation15]  }
  0x62   : > { %s382_s29 = sshll.u32 %s2022_s20, 4  ;;  %s401_s16 = sshll.u32 %s2023_s14, 4  ;;  %s383_s29 = int_to_ptr.vmem [resolvable:$true] %s382_s29  ;;  %s402_s16 = int_to_ptr.vmem [resolvable:$true] %s401_s16 }
  0x63   : > { %s1849_s12 = scalar_lea.hbm %s2625_s8, 256 }
  0x64   : > { %p1850_p7 = scmp.ne.s32.totalorder %s2625_s8, %s1849_s12  ;;  %p1856_p1 = scmp.lt.u32.totalorder %s1849_s12, %s2625_s8 }
  0x66   : > { %p1852_p9 = pnand %p1850_p7, %p2166_p8 }
  0x68   : > { %p1853_p4 = pneg %p1852_p9 }
  0x6a   : > { %p1858_p3 = pnand %p1856_p1, %p1853_p4 }
  0x6c   : > { %1861 = shalt.err (!%p1858_p3)
}
  0x6d   : > { %s1862_s15 = scalar_lea.vmem %s383_s29, 256  ;;  %p1870_p13 = scmp.lt.s32.totalorder %s383_s29, %s383_s29 }
  0x6e   : > { %p1863_p10 = scmp.ne.s32.totalorder %s383_s29, %s1862_s15  ;;  %p1871_p0 = scmp.lt.s32.totalorder %s1862_s15, %s1862_s15 }
  0x70   : > { %p1865_p11 = pnand %p1863_p10, %p2166_p8  ;;  %p1872_p2 = por %p1871_p0, %p1870_p13 }
  0x72   : > { %p1866_p12 = pneg %p1865_p11 }
  0x74   : > { %p1873_p5 = pnand %p1872_p2, %p1866_p12 }
  0x76   : > { %1876 = shalt.err (!%p1873_p5)
}
  0x77   : > { %s2648_s6 = smov 8   ;;  %s2649_s9 = smov 128  }
  0x78   : > { %1660 = dma.hbm_to_vmem [thread:$0]  (!%p2152_p6), %s2625_s8, 256, %s383_s29, [#allocation13], %s2649_s9, %s2649_s9, %s2648_s6  }
  0x79   : > { %s1877_s3 = scalar_lea.hbm %s2628_s11, 2048 }
  0x7a   : > { %p1878_p7 = scmp.ne.s32.totalorder %s2628_s11, %s1877_s3  ;;  %p1884_p1 = scmp.lt.u32.totalorder %s1877_s3, %s2628_s11 }
  0x7c   : > { %p1880_p9 = pnand %p1878_p7, %p2166_p8 }
  0x7e   : > { %p1881_p4 = pneg %p1880_p9 }
  0x80   : > { %p1886_p3 = pnand %p1884_p1, %p1881_p4 }
  0x82   : > { %1889 = shalt.err (!%p1886_p3)
}
  0x83   : > { %s1890_s26 = scalar_lea.vmem %s402_s16, 2048  ;;  %p1898_p13 = scmp.lt.s32.totalorder %s402_s16, %s402_s16 }
  0x84   : > { %p1891_p10 = scmp.ne.s32.totalorder %s402_s16, %s1890_s26  ;;  %p1899_p0 = scmp.lt.s32.totalorder %s1890_s26, %s1890_s26 }
  0x86   : > { %p1893_p11 = pnand %p1891_p10, %p2166_p8  ;;  %p1900_p2 = por %p1899_p0, %p1898_p13 }
  0x88   : > { %p1894_p12 = pneg %p1893_p11 }
  0x8a   : > { %p1901_p5 = pnand %p1900_p2, %p1894_p12 }
  0x8c   : > { %1904 = shalt.err (!%p1901_p5)
}
  0x8d   : > { %s2024_s29 = smov 256   ;;  %s2025_s25 = smov 16  }
  0x8e   : > { %1663 = dma.hbm_to_vmem [thread:$0]  (!%p2152_p6), %s2628_s11, 2048, %s402_s16, [#allocation16], %s2024_s29, %s2024_s29, %s2025_s25  }
  0x8f   : > { %s1536_s6 = sadd.s32 4294967294, %s2013_s24   ;;  %s2272_s9 = sadd.s32 1, %s2013_s24  }
  0x90   : > { %s38_s2 = sadd.s32 1, %s2009_s23  ;;  %s35_s5 = ssub.s32 %s2013_s24, %s2272_s9 }
  0x91   : > { %p45_p8 = scmp.ne.s32.totalorder %s2009_s23, %s2005_s22  ;;  %p36_p7 = scmp.eq.s32.totalorder %s35_s5, 0 }
  0x92   : > { %p46_p9 = scmp.eq.s32.totalorder %s2013_s24, 0  ;;  %p51_p4 = scmp.ne.s32.totalorder %s2005_s22, %s2001_s21 }
  0x93   : > { %p311_p1 = scmp.eq.s32.totalorder %s2136_s27, 1  ;;  %p2650_p10 = scmp.eq.s32.totalorder %s2136_s27, 0 }
  0x94   : > { %s2284_s12 = scalar_select %p36_p7, %s2009_s23, %s38_s2  }
  0x95   : > { %p47_p3 = por %p46_p9, %p45_p8  ;;  %p2288_p11 = por %p2650_p10, %p51_p4 }
  0x96   : > { %p2292_p6 = por %p311_p1, %p45_p8  ;;  %p317_p12 = scmp.eq.s32.totalorder %s1536_s6, 1 }
  0x97   : > { %p1677_p13 = scmp.lt.s32.totalorder %s2013_s24, 2  ;;  %s415_s17 = sand.u32 1, %s2009_s23  }
  0x98   : > { %s2652_s16 = scalar_select %p2292_p6, 1, 0 }
  0x99   : > { %p2298_p0 = por %p317_p12, %p51_p4  ;;  %s1544_s19 = sshll.u32 %s415_s17, 3 }
  0x9a   : > { %s1578_s18 = sshll.u32 %s2013_s24, 7  ;;  %s419_s29 = scalar_lea.vmem [#allocation6], %s1544_s19 }
  0x9b   : > { %s2653_s3 = scalar_select %p2298_p0, 1, 0 }
  0x9c   : > { %s2306_s26 = scalar_lea.hbm %s2617_s0, %s1578_s18  ;;  %s427_s25 = sshll.u32 %s419_s29, 4  ;;  %s2312_s25 = int_to_ptr.vmem [resolvable:$true] %s427_s25 }
  0x9d   : > { %p2308_p2 = pnand %p1677_p13, %p47_p3  ;;  %s416_s15 = scalar_lea.sflag [#allocation7], %s415_s17 }
  0x9e   : > { %s1905_s6 = scalar_lea.hbm %s2306_s26, 128  ;;  %s1910_s19 = scalar_lea.hbm %s2617_s0, 256 }
  0x9f   : > { %p1906_p5 = scmp.ne.s32.totalorder %s2306_s26, %s1905_s6  ;;  %p1907_p8 = pneg %p2308_p2 }
  0xa0   : > { %p1911_p4 = scmp.lt.u32.totalorder %s2306_s26, %s2617_s0  ;;  %p1912_p1 = scmp.lt.u32.totalorder %s1910_s19, %s1905_s6 }
  0xa1   : > { %p1908_p7 = pnand %p1907_p8, %p1906_p5  ;;  %p1914_p10 = scmp.lt.u32.totalorder %s1905_s6, %s2306_s26 }
  0xa2   : > { %p1913_p3 = por %p1912_p1, %p1911_p4 }
  0xa3   : > { %p1909_p9 = pneg %p1908_p7 }
  0xa4   : > { %p1915_p12 = por %p1914_p10, %p1913_p3 }
  0xa6   : > { %p1916_p13 = pnand %p1915_p12, %p1909_p9 }
  0xa8   : > { %1919 = shalt.err (!%p1916_p13)
}
  0xa9   : > { %s1920_s17 = scalar_lea.vmem %s2312_s25, 128  ;;  %s2026_s14 = smov [#allocation6]  }
  0xaa   : > { %p1921_p5 = scmp.ne.s32.totalorder %s2312_s25, %s1920_s17  ;;  %s1925_s29 = sshll.u32 %s2026_s14, 4  ;;  %s1926_s29 = int_to_ptr.vmem [resolvable:$false] %s1925_s29 }
  0xab   : > { %s1927_s2 = scalar_lea.vmem %s1926_s29, 256  ;;  %p1928_p6 = scmp.lt.s32.totalorder %s2312_s25, %s1926_s29 }
  0xac   : > { %p1923_p7 = pnand %p1921_p5, %p1907_p8  ;;  %p1929_p4 = scmp.lt.s32.totalorder %s1927_s2, %s1920_s17 }
  0xae   : > { %p1924_p0 = pneg %p1923_p7  ;;  %p1930_p1 = por %p1929_p4, %p1928_p6 }
  0xb0   : > { %p1931_p3 = pnand %p1930_p1, %p1924_p0 }
  0xb2   : > { %1934 = shalt.err (!%p1931_p3)
}
  0xb3   : > { %1667 = dma.hbm_to_vmem [thread:$0]  (!%p2308_p2), %s2306_s26, 128, %s2312_s25, %s416_s15  }
  0xb4   : > { %p2655_p9 = scmp.ne.s32.totalorder %s2643_s28, 0 }
  0xb5   : > { %s2342_s6 = sand.u32 (!%p2655_p9), 1, %s2005_s22  }
  0xb6   : > { %442 = sbr.rel (%p2655_p9) target bundleno = 1364 (0x554), region = 68  ;;  %s1548_s5 = sshll.u32 (!%p2655_p9), %s2342_s6, 3 }
  0xb7   : > { %s445_s19 = scalar_lea.sflag (!%p2655_p9), [#allocation7], %s2342_s6  ;;  %s2346_s18 = scalar_lea.vmem (!%p2655_p9), [#allocation6], %s1548_s5 }
  0xbd   : > { %1980 = dma.done.wait (%p2288_p11), %s445_s19, 128  }
  0xbe   : > { %1982 = vsyncadd (%p2288_p11), %s445_s19, 4294967168  ;;  %p2656_p6 = scmp.eq.s32.totalorder %s2136_s27, 0 }
  0xc0   : > { %1984 = dma.done.wait (%p2656_p6), [#allocation10], 320   ;;  %p2657_p0 = pmov %p2656_p6 }
  0xc2   : > { %1986 = vsyncadd (%p2657_p0), [#allocation10], 4294966976  ;;  %p2658_p2 = pmov %p2657_p0 }
  0xc3   : > { %p2659_p8 = pmov %p2657_p0 }
  0xc4   : > { %1988 = dma.done.wait (%p2658_p2), [#allocation13], 512  }
  0xc5   : > { %1990 = vsyncadd (%p2659_p8), [#allocation13], 4294966784  ;;  %p2660_p10 = pmov %p2657_p0 }
  0xc6   : > { %p2661_p12 = pmov %p2657_p0 }
  0xc7   : > { %1992 = dma.done.wait (%p2660_p10), [#allocation16], 2048  }
  0xc8   : > { %1994 = vsyncadd (%p2661_p12), [#allocation16], 4294965248  ;;  %p512_p11 = scmp.lt.s32.totalorder %s2136_s27, 1  ;;  %v2027_v0 = vmov 0.0   ;;  %vm2028_vm0 = vmmov 0   ;;  %v1751_v1 = vld [vmem:[#allocation11] sm:$0xff]   ;;  %v555_v11 = vlaneseq }
  0xc9   : > { %1588 = vmatprep.subr.bf16.mxu1 %v2027_v0  ;;  %524 = vst [vmem:[#allocation2 + $0x8] sm:$0xf0] %v2027_v0  ;;  %1592 = vmatprep.mubr.msk.bf16.mxu1 %vm2028_vm0, %v2027_v0  ;;  %v1752_v2 = vld [vmem:[#allocation11 + $0x8] sm:$0xff]   ;;  %vm762_vm1 = vcmask 261120   ;;  %v1755_v7 = vld [vmem:[%s2624_s7 + $0x10] sm:$0xff]   ;;  %v1756_v8 = vld [vmem:[%s2624_s7 + $0x18] sm:$0xff]  }
  0xca   : > { %s513_s28 = scalar_select %p512_p11, %s2136_s27, 1  ;;  %1589 = vmatpush3.bf16.msra.mxu1 %v1751_v1  ;;  %v1753_v5 = vld [vmem:[%s2624_s7] sm:$0xff]   ;;  %v1754_v6 = vld [vmem:[%s2624_s7 + $0x8] sm:$0xff]   ;;  %v2405_v13 = vshrl.u32 %v555_v11, 7  ;;  %v993_v24 = vld [vmem:[#allocation12 + $0x8] sm:$0xff]  ;;  %vm1033_vm3 = vcmask 523264  }
  0xcb   : > { %1590 = vmatprep.subr.bf16.mxu1 %v2027_v0  ;;  %v1567_v9 = vld [vmem:[%s2627_s10 + $0x1] ss:$0 sm:$0xff]  ;;  %s2029_s13 = smov 2   ;;  %s2030_s26 = smov 10   ;;  %v1566_v10 = vld [vmem:[%s2627_s10] ss:$0 sm:$0xff] }
  0xcc   : > { %s514_s25 = scalar_lea.vmem %s2618_s1, %s513_s28  ;;  %1108 = vrot.lane.b32.xlu0 %v1567_v9, %s2029_s13  ;;  %1143 = vrot.lane.b32.xlu1 %v1567_v9, %s2030_s26  ;;  %s2031_s15 = smov 8   ;;  %v2408_v20 = vsub.s32 0, %v2405_v13  ;;  %v992_v23 = vld [vmem:[#allocation12] sm:$0xff]  ;;  %v2034_v29 = vmov 0   ;;  %vm1078_vm4 = vcmask 670720   ;;  %vm516_vm5 = vcmask 138240  }
  0xcd   : > { %v926_v3 = vld [vmem:[%s514_s25] sm:$0x1]  ;;  %s2032_s20 = smov 16   ;;  %s2033_s17 = smov 18   ;;  %1749 = vset.pattern.permute.xlu1 %v2034_v29  ;;  %1750 = vset.pattern.permute.xlu0 %v2034_v29  ;;  %vm522_vm6 = vcmask 1047692   ;;  %vm527_vm7 = vcmask 1047688  }
  0xce   : > { %v927_v4 = vpack.c.bf16 %v926_v3, %v926_v3  ;;  %1591 = vmatpush3.bf16.msra.mxu1 %v1752_v2  ;;  %s2662_s2 = sld [smem:[#allocation25_spill]]  ;;  %s2035_s5 = smov 127   ;;  %517 = vst.msk [vmem:[#allocation2] sm:$0xff] %vm516_vm5, %v2027_v0  ;;  %518 = vst.msk [vmem:[#allocation2 + $0x18] sm:$0xff] %vm516_vm5, %v2027_v0  ;;  %vm519_vm8 = vcmask 277640   ;;  %vm525_vm9 = vcmask 138244  }
  0xcf   : > { %1596 = vmatprep.subr.bf16.mxu1 %v2027_v0  ;;  %s2036_s19 = smov 126   ;;  %523 = vst.msk [vmem:[#allocation2] sm:$0xf0] %vm522_vm6, %v2027_v0  ;;  %s2037_s28 = smov 120   ;;  %v531_v60 = vld [vmem:[%s2346_s18] sm:$0xff]  ;;  %v561_v1 = vsub.s32 1, %v2405_v13 }
  0xd0   : > { %1122 = vrot.lane.b32.xlu0 %v1566_v10, %s2031_s15  ;;  %1156 = vrot.lane.b32.xlu1 %v1566_v10, %s2032_s20  ;;  %528 = vst.msk [vmem:[#allocation2 + $0x18] sm:$0xff] %vm527_vm7, %v2027_v0  ;;  %s2038_s26 = smov 119   ;;  %s2039_s25 = smov 118   ;;  %v549_v62 = vld [vmem:[#allocation9 + $0x1] ss:$2 sm:$0x3]  ;;  %v533_v63 = vcombine.high %v531_v60, %v531_v60 }
  0xd1   : > { %1593 = vmatmul.mubr.msk.bf16.vlgmr.msra.gmra.mrb[0].mxu1 %vm762_vm1, %v927_v4  ;;  %520 = vst.msk [vmem:[#allocation2 + $0x10] sm:$0xff] %vm519_vm8, %v2027_v0  ;;  %521 = vst.msk [vmem:[#allocation2 + $0x28] sm:$0xff] %vm519_vm8, %v2027_v0  ;;  %s2040_s30 = smov 112   ;;  %s2041_s15 = smov 111   ;;  %v608_v2 = vrot.slane %v549_v62, %v2408_v20  ;;  %v612_v4 = vrot.slane %v549_v62, %v561_v1  ;;  %vm657_vm10 = vcmask 130048   ;;  %vm542_vm11 = vcmask 1043592  }
  0xd2   : > { %1597 = vmatpush3.bf16.msra.mxu1 %v1753_v5  ;;  %1604 = vmatprep.mubr.msk.bf16.mxu1 %vm2028_vm0, %v2027_v0  ;;  %526 = vst.msk [vmem:[#allocation2 + $0x10] sm:$0xf0] %vm525_vm9, %v2027_v0  ;;  %s2042_s14 = smov 110   ;;  %s2043_s29 = smov 17   ;;  %vm545_vm12 = vcmask 134144   ;;  %vm617_vm13 = vcmask 15360  }
  0xd3   : > { %1598 = vmatprep.subr.bf16.mxu1 %v2027_v0  ;;  %530 = vst.msk [vmem:[#allocation2 + $0x28] sm:$0xff] %vm516_vm5, %v2027_v0  ;;  %v547_v3 = vld [vmem:[#allocation9] ss:$2 sm:$0x3]  ;;  %s2044_s18 = smov 32   ;;  %vm722_vm14 = vcmask 146432  }
  0xd4   : > { %1177 = vrot.lane.b32.xlu0 %v1567_v9, %s2033_s17  ;;  %v932_v12 = vld [vmem:[%s2662_s2] sm:$0x1]  ;;  %v2438_v5 = vrot.slane %v547_v3, %v2408_v20  ;;  %s2045_s2 = smov 34   ;;  %vm827_vm15 = vcmask 277504   ;;  %vm591_vm0 = vcmask 1039360   ;;  %vm785_vm6 = vcmask 785408  }
  0xd5   : > { %vm810_vm7 = vcmask 777216   ;;  %vm850_vm8 = vcmask 769024   ;;  %p2666_p5 = scmp.ne.s32.totalorder %s2652_s16, 0 }
  0xd6   : > { %1599 = vmatpush3.bf16.msra.mxu1 %v1754_v6  ;;  %v2441_v6 = vrot.slane %v547_v3, %v561_v1 }
  0xd7   : > { %1600 = vmatprep.subr.bf16.mxu1 %v2027_v0 }
  0xda   : > { %1601 = vmatpush3.bf16.msra.mxu1 %v1755_v7  ;;  %v1758_v7 = vld [vmem:[#allocation14 + $0x4] ss:$8 sps:$4 sm:$0xff]  }
  0xdb   : > { %1602 = vmatprep.subr.bf16.mxu1 %v2027_v0 }
  0xde   : > { %1603 = vmatpush3.bf16.msra.mxu1 %v1756_v8 }
  0xdf   : > { %1223 = vmatprep.subr.bf16.mxu1 %v2034_v29 }
 0x13e   : > { %v1109_v34 = vpop.permute.xlu0 %1108  ;;  %v1144_v39 = vpop.permute.xlu1 %1143 }
 0x142   : > { %v1123_v40 = vpop.permute.xlu0 %1122  ;;  %v1157_v50 = vpop.permute.xlu1 %1156 }
 0x146   : > { %v1178_v55 = vpop.permute.xlu0 %1177 }
 0x1a4   : > { %v982_v14 = vpop.f32.mrb[0].mxu1 }
 0x1a5   : > { %v983_v15 = vadd.f32 %v982_v14, %v932_v12  ;;  %v1594_v16 = vpop.f32.mrb[1].mxu1 }
 0x1a6   : > { %v985_v17 = vpop.f32.mrb[2].mxu1 }
 0x1a7   : > { %vm988_vm2 = vcmp.ge.f32.partialorder %v983_v15, 0.0  ;;  %v989_v18 = vmul.f32 0.2, %v983_v15  ;;  %v1595_v19 = vpop.f32.mrb[3].mxu1 }
 0x1a9   : > { %v990_v21 = vsel %vm988_vm2, %v983_v15, %v989_v18  ;;  %vm680_vm2 = vcmask 916480  }
 0x1aa   : > { %v991_v22 = vmul.f32 1.4142135, %v990_v21 }
 0x1ac   : > { %v997_v25 = vrot.slane %v991_v22, %v2408_v20 }
 0x1ae   : > { %v998_v26 = vmul.f32 %v997_v25, %v992_v23  ;;  %v999_v27 = vmul.f32 %v997_v25, %v993_v24 }
 0x1b0   : > { %v1000_v28 = vpack.c.bf16 %v999_v27, %v998_v26 }
 0x1b2   : > { %1605 = vmatmul.mubr.msk.bf16.vlgmr.msra.gmra.mrb[4].mxu1 %vm1033_vm3, %v1000_v28  ;;  %v2467_v28 = vld [vmem:[#allocation2 + $0x18] sm:$0xff] }
 0x1b3   : > { %1570 = vmatprep.mubr.msk.bf16.mxu1 %vm657_vm10, %v1758_v7 }
 0x285   : > { %v1071_v30 = vpop.f32.mrb[4].mxu1 }
 0x286   : > { %1079 = vst.msk [vmem:[#allocation4] sm:$0xff] %vm1078_vm4, %v1071_v30  ;;  %v1606_v31 = vpop.f32.mrb[5].mxu1  ;;  %v2469_v30 = vld [vmem:[#allocation2 + $0x28] sm:$0xff] }
 0x287   : > { %v1074_v32 = vpop.f32.mrb[6].mxu1 }
 0x288   : > { %1080 = vst.msk [vmem:[#allocation4 + $0x8] sm:$0xff] %vm1078_vm4, %v1074_v32  ;;  %v1607_v33 = vpop.f32.mrb[7].mxu1  ;;  %vm705_vm4 = vcmask 908288  }
 0x28d   : > { %v1083_v35 = vld [vmem:[#allocation4] sm:$0xff] }
 0x28e   : > { %v1089_v37 = vmul.f32 %v1566_v10, %v1083_v35  ;;  %v1111_v43 = vmul.f32 %v1109_v34, %v1083_v35  ;;  %v1125_v46 = vmul.f32 %v1123_v40, %v1083_v35  ;;  %v1146_v51 = vmul.f32 %v1144_v39, %v1083_v35 }
 0x28f   : > { %v1084_v36 = vld [vmem:[#allocation4 + $0x8] sm:$0xff]  ;;  %v1159_v54 = vmul.f32 %v1157_v50, %v1083_v35  ;;  %v1180_v59 = vmul.f32 %v1178_v55, %v1083_v35 }
 0x290   : > { %v1090_v38 = vmul.f32 %v1566_v10, %v1084_v36  ;;  %v1126_v41 = vmul.f32 %v1123_v40, %v1084_v36  ;;  %v1095_v42 = vpack.c.bf16 %v1084_v36, %v1083_v35  ;;  %v1112_v44 = vmul.f32 %v1109_v34, %v1084_v36 }
 0x291   : > { %v1147_v48 = vmul.f32 %v1144_v39, %v1084_v36  ;;  %v1160_v52 = vmul.f32 %v1157_v50, %v1084_v36  ;;  %v1181_v57 = vmul.f32 %v1178_v55, %v1084_v36  ;;  %v568_v34 = vmul.f32 0.0, %v2441_v6 }
 0x292   : > { %v1091_v45 = vpack.c.bf16 %v1090_v38, %v1089_v37  ;;  %1097 = vrot.lane.b32.xlu1 %v1095_v42, %s2035_s5  ;;  %v1113_v47 = vpack.c.bf16 %v1112_v44, %v1111_v43  ;;  %v1127_v49 = vpack.c.bf16 %v1126_v41, %v1125_v46  ;;  %v567_v39 = vmul.f32 %v2467_v28, %v2438_v5 }
 0x293   : > { %v1148_v53 = vpack.c.bf16 %v1147_v48, %v1146_v51  ;;  %v1161_v56 = vpack.c.bf16 %v1160_v52, %v1159_v54  ;;  %v1182_v61 = vpack.c.bf16 %v1181_v57, %v1180_v59 }
 0x294   : > { %1092 = vst.msk [vmem:[#allocation5] sm:$0xff] %vm1033_vm3, %v1091_v45  ;;  %1115 = vrot.lane.b32.xlu0 %v1113_v47, %s2036_s19 }
 0x296   : > { %1129 = vrot.lane.b32.xlu1 %v1127_v49, %s2037_s28  ;;  %s2048_s28 = smov 94  }
 0x298   : > { %1137 = vrot.lane.b32.xlu0 %v1095_v42, %s2038_s26  ;;  %s2049_s26 = smov [#allocation17]  }
 0x29a   : > { %1150 = vrot.lane.b32.xlu1 %v1148_v53, %s2039_s25  ;;  %s1939_s25 = sshll.u32 %s2049_s26, 4  ;;  %s1940_s25 = int_to_ptr.vmem [resolvable:$false] %s1939_s25 }
 0x29b   : > { %v1190_v58 = vld [vmem:[#allocation5] sm:$0xff] }
 0x29c   : > { %1224 = vmatpush1.bf16.msra.mxu1 %v1190_v58  ;;  %1163 = vrot.lane.b32.xlu0 %v1161_v56, %s2040_s30  ;;  %v1760_v58 = vld [vmem:[#allocation14] ss:$8 sps:$4 sm:$0xff]  }
 0x29d   : > { %1225 = vmatprep.subr.bf16.mxu1 %v2034_v29 }
 0x29e   : > { %1171 = vrot.lane.b32.xlu1 %v1095_v42, %s2041_s15 }
 0x2a0   : > { %1184 = vrot.lane.b32.xlu0 %v1182_v61, %s2042_s14 }
 0x2a2   : > { %534 = vrot.lane.b32.xlu1 %v531_v60, %s2043_s29 }
 0x2a4   : > { %536 = vrot.lane.b32.xlu0 %v533_v63, %s2043_s29  ;;  %s1554_s29 = sshll.u32 %s2342_s6, 4 }
 0x2a6   : > { %613 = vrot.lane.b32.xlu1 %v608_v2, %s2029_s13 }
 0x2a8   : > { %615 = vrot.lane.b32.xlu0 %v612_v4, %s2029_s13  ;;  %s2046_s13 = smov 96  }
 0x2aa   : > { %653 = vrot.lane.b32.xlu1 %v2438_v5, %s2032_s20 }
 0x2ac   : > { %655 = vrot.lane.b32.xlu0 %v2441_v6, %s2032_s20 }
 0x2ae   : > { %718 = vrot.lane.b32.xlu1 %v608_v2, %s2033_s17 }
 0x2b0   : > { %720 = vrot.lane.b32.xlu0 %v612_v4, %s2033_s17 }
 0x2b2   : > { %758 = vrot.lane.b32.xlu1 %v2438_v5, %s2044_s18 }
 0x2b4   : > { %760 = vrot.lane.b32.xlu0 %v2441_v6, %s2044_s18  ;;  %s1579_s18 = sshll.u32 %s2136_s27, 8  ;;  %s1395_s27 = scalar_lea.sflag [#allocation8], %s2342_s6 }
 0x2b6   : > { %823 = vrot.lane.b32.xlu1 %v608_v2, %s2045_s2 }
 0x2b8   : > { %825 = vrot.lane.b32.xlu0 %v612_v4, %s2045_s2  ;;  %s511_s2 = scalar_lea.vmem [#allocation17], %s1554_s29 }
 0x304   : > { %v1098_v8 = vpop.permute.xlu1 %1097 }
 0x305   : > { %1100 = vst.msk [vmem:[#allocation5 + $0x8] sm:$0xff] %vm1033_vm3, %v1098_v8 }
 0x306   : > { %v1116_v9 = vpop.permute.xlu0 %1115 }
 0x307   : > { %1118 = vst.msk [vmem:[#allocation5 + $0x10] sm:$0xff] %vm1033_vm3, %v1116_v9 }
 0x308   : > { %v1130_v10 = vpop.permute.xlu1 %1129 }
 0x309   : > { %1132 = vst.msk [vmem:[#allocation5 + $0x18] sm:$0xff] %vm1033_vm3, %v1130_v10 }
 0x30a   : > { %v1138_v11 = vpop.permute.xlu0 %1137 }
 0x30b   : > { %1140 = vst.msk [vmem:[#allocation5 + $0x20] sm:$0xff] %vm1033_vm3, %v1138_v11 }
 0x30c   : > { %v1151_v12 = vpop.permute.xlu1 %1150  ;;  %v1191_v13 = vld [vmem:[#allocation5 + $0x8] sm:$0xff] }
 0x30d   : > { %1153 = vst.msk [vmem:[#allocation5 + $0x28] sm:$0xff] %vm1033_vm3, %v1151_v12  ;;  %1226 = vmatpush1.bf16.msra.mxu1 %v1191_v13 }
 0x30e   : > { %v1164_v14 = vpop.permute.xlu0 %1163  ;;  %1227 = vmatprep.subr.bf16.mxu1 %v2034_v29  ;;  %v1192_v16 = vld [vmem:[#allocation5 + $0x10] sm:$0xff] }
 0x30f   : > { %1166 = vst.msk [vmem:[#allocation5 + $0x30] sm:$0xff] %vm1033_vm3, %v1164_v14 }
 0x310   : > { %v1172_v15 = vpop.permute.xlu1 %1171  ;;  %v1193_v19 = vld [vmem:[#allocation5 + $0x18] sm:$0xff] }
 0x311   : > { %1174 = vst.msk [vmem:[#allocation5 + $0x38] sm:$0xff] %vm1033_vm3, %v1172_v15  ;;  %1228 = vmatpush1.bf16.msra.mxu1 %v1192_v16 }
 0x312   : > { %v1185_v17 = vpop.permute.xlu0 %1184  ;;  %1229 = vmatprep.subr.bf16.mxu1 %v2034_v29  ;;  %v1194_v22 = vld [vmem:[#allocation5 + $0x20] sm:$0xff] }
 0x313   : > { %1187 = vst.msk [vmem:[#allocation5 + $0x40] sm:$0xff] %vm1033_vm3, %v1185_v17 }
 0x314   : > { %v535_v18 = vpop.permute.xlu1 %534  ;;  %v1195_v26 = vld [vmem:[#allocation5 + $0x28] sm:$0xff] }
 0x315   : > { %543 = vst.msk [vmem:[#allocation2] sm:$0xf] %vm542_vm11, %v535_v18  ;;  %1230 = vmatpush1.bf16.msra.mxu1 %v1193_v19 }
 0x316   : > { %v537_v20 = vpop.permute.xlu0 %536  ;;  %1231 = vmatprep.subr.bf16.mxu1 %v2034_v29  ;;  %v1196_v36 = vld [vmem:[#allocation5 + $0x30] sm:$0xff] }
 0x317   : > { %v538_v21 = vsel %vm516_vm5, %v535_v18, %v537_v20  ;;  %546 = vst.msk [vmem:[#allocation2 + $0x10] sm:$0xf] %vm545_vm12, %v537_v20  ;;  %vm745_vm5 = vcmask 900096  }
 0x318   : > { %544 = vst [vmem:[#allocation2 + $0x8] sm:$0xf] %v538_v21  ;;  %v614_v23 = vpop.permute.xlu1 %613  ;;  %v1197_v47 = vld [vmem:[#allocation5 + $0x38] sm:$0xff] }
 0x319   : > { %1232 = vmatpush1.bf16.msra.mxu1 %v1194_v22  ;;  %v625_v46 = vmul.f32 %v614_v23, %v2467_v28 }
 0x31a   : > { %v616_v24 = vpop.permute.xlu0 %615  ;;  %1233 = vmatprep.subr.bf16.mxu1 %v2034_v29  ;;  %v1198_v56 = vld [vmem:[#allocation5 + $0x40] sm:$0xff] }
 0x31b   : > { %v618_v25 = vsel %vm617_vm13, %v614_v23, %v616_v24  ;;  %v627_v50 = vmul.f32 %v616_v24, %v2469_v30 }
 0x31c   : > { %v2465_v27 = vld [vmem:[#allocation2] sm:$0xff]  ;;  %v626_v32 = vmul.f32 0.0, %v618_v25  ;;  %v654_v51 = vpop.permute.xlu1 %653 }
 0x31d   : > { %1234 = vmatpush1.bf16.msra.mxu1 %v1195_v26  ;;  %v565_v38 = vmul.f32 %v2465_v27, %v2438_v5  ;;  %v622_v45 = vmul.f32 %v614_v23, %v2465_v27  ;;  %v2503_v52 = vpack.c.bf16 %v2467_v28, %v2465_v27  ;;  %v665_v1 = vmul.f32 %v654_v51, %v2467_v28 }
 0x31e   : > { %v2471_v31 = vld [vmem:[#allocation2 + $0x10] sm:$0xff]  ;;  %1235 = vmatprep.subr.bf16.mxu1 %v2034_v29  ;;  %v656_v43 = vpop.permute.xlu0 %655 }
 0x31f   : > { %v2474_v33 = vld [vmem:[#allocation2 + $0x8] sm:$0xff]  ;;  %v2480_v37 = vpack.c.bf16 %v2469_v30, %v2471_v31  ;;  %v569_v48 = vpack.c.bf16 %v567_v39, %v565_v38  ;;  %v624_v49 = vmul.f32 %v616_v24, %v2471_v31  ;;  %v658_v53 = vsel %vm657_vm10, %v654_v51, %v656_v43 }
 0x320   : > { %v623_v35 = vmul.f32 %v618_v25, %v2474_v33  ;;  %v2488_v40 = vpack.c.bf16 %v2027_v0, %v2474_v33  ;;  %v566_v41 = vmul.f32 %v2474_v33, %v2441_v6  ;;  %v664_v54 = vmul.f32 %v656_v43, %v2471_v31  ;;  %v719_v3 = vpop.permute.xlu1 %718 }
 0x321   : > { %1236 = vmatpush1.bf16.msra.mxu1 %v1196_v36  ;;  %589 = vrot.lane.b32.xlu0 %v2480_v37, %s2035_s5  ;;  %v667_v55 = vmul.f32 %v656_v43, %v2469_v30  ;;  %v628_v57 = vpack.c.bf16 %v625_v46, %v622_v45  ;;  %v663_v59 = vmul.f32 %v658_v53, %v2474_v33  ;;  %v666_v60 = vmul.f32 0.0, %v658_v53 }
 0x322   : > { %1237 = vmatprep.subr.bf16.mxu1 %v2034_v29  ;;  %v629_v42 = vpack.c.bf16 %v626_v32, %v623_v35  ;;  %587 = vrot.lane.b32.xlu1 %v2488_v40, %s2035_s5  ;;  %v570_v44 = vpack.c.bf16 %v568_v34, %v566_v41  ;;  %v630_v61 = vpack.c.bf16 %v627_v50, %v624_v49  ;;  %v721_v62 = vpop.permute.xlu0 %720 }
 0x323   : > { %v670_v63 = vpack.c.bf16 %v667_v55, %v664_v54  ;;  %v669_v2 = vpack.c.bf16 %v666_v60, %v663_v59  ;;  %v723_v5 = vsel %vm722_vm14, %v719_v3, %v721_v62  ;;  %v729_v7 = vmul.f32 %v721_v62, %v2471_v31 }
 0x324   : > { %885 = vmatprep.subr.bf16.mxu0 %v570_v44  ;;  %v732_v8 = vmul.f32 %v721_v62, %v2469_v30  ;;  %v759_v9 = vpop.permute.xlu1 %758  ;;  %v728_v10 = vmul.f32 %v723_v5, %v2474_v33  ;;  %v731_v11 = vmul.f32 0.0, %v723_v5  ;;  %v727_v16 = vmul.f32 %v719_v3, %v2465_v27 }
 0x325   : > { %1238 = vmatpush1.bf16.msra.mxu1 %v1197_v47  ;;  %636 = vrot.lane.b32.xlu0 %v629_v42, %s2036_s19  ;;  %v730_v17 = vmul.f32 %v719_v3, %v2467_v28  ;;  %v767_v19 = vmul.f32 %v759_v9, %v2465_v27  ;;  %v770_v20 = vmul.f32 %v759_v9, %v2467_v28 }
 0x326   : > { %886 = vmatpush1.bf16.msra.mxu0 %v569_v48  ;;  %585 = vrot.lane.b32.xlu1 %v2503_v52, %s2035_s5  ;;  %v761_v6 = vpop.permute.xlu0 %760  ;;  %v735_v15 = vpack.c.bf16 %v732_v8, %v729_v7  ;;  %v734_v18 = vpack.c.bf16 %v731_v11, %v728_v10  ;;  %s2663_s5 = sld [smem:[#allocation23_spill]] }
 0x327   : > { %1239 = vmatprep.subr.bf16.mxu1 %v2034_v29  ;;  %v662_v29 = vmul.f32 %v654_v51, %v2465_v27  ;;  %v763_v12 = vsel %vm762_vm1, %v759_v9, %v761_v6  ;;  %v769_v22 = vmul.f32 %v761_v6, %v2471_v31  ;;  %v772_v23 = vmul.f32 %v761_v6, %v2469_v30 }
 0x328   : > { %v768_v13 = vmul.f32 %v763_v12, %v2474_v33  ;;  %v771_v14 = vmul.f32 0.0, %v763_v12  ;;  %v733_v24 = vpack.c.bf16 %v730_v17, %v727_v16  ;;  %v824_v26 = vpop.permute.xlu1 %823  ;;  %v773_v32 = vpack.c.bf16 %v770_v20, %v767_v19  ;;  %v1284_v16 = vld [vmem:[#allocation15 + $0x8] sm:$0xff]  ;;  %v1286_v17 = vld [vmem:[#allocation15 + $0x18] sm:$0xff] }
 0x329   : > { %1240 = vmatpush1.bf16.msra.mxu1 %v1198_v56  ;;  %634 = vrot.lane.b32.xlu0 %v628_v57, %s2036_s19  ;;  %v668_v4 = vpack.c.bf16 %v665_v1, %v662_v29  ;;  %v775_v35 = vpack.c.bf16 %v772_v23, %v769_v22  ;;  %v832_v42 = vmul.f32 %v824_v26, %v2465_v27  ;;  %vm640_vm1 = vcmask 1031168   ;;  %v1285_v22 = vld [vmem:[#allocation15 + $0x10] sm:$0xff] }
 0x32a   : > { %638 = vrot.lane.b32.xlu1 %v630_v61, %s2036_s19  ;;  %v774_v21 = vpack.c.bf16 %v771_v14, %v768_v13  ;;  %v826_v25 = vpop.permute.xlu0 %825  ;;  %s2047_s19 = smov 95   ;;  %v1608_v20 = vpack.c.bf16 %v1286_v17, %v1284_v16 }
 0x32b   : > { %v828_v34 = vsel %vm827_vm15, %v824_v26, %v826_v25  ;;  %v834_v44 = vmul.f32 %v826_v25, %v2471_v31  ;;  %v837_v45 = vmul.f32 %v826_v25, %v2469_v30  ;;  %v1290_v25 = vld [vmem:[#allocation15 + $0x38] sm:$0xff] }
 0x32c   : > { %1256 = vmatmul.mubr.bf16.vlgmr.msra.gmra.mrb[8].mxu1 %v1760_v58  ;;  %v833_v36 = vmul.f32 %v828_v34, %v2474_v33  ;;  %v836_v38 = vmul.f32 0.0, %v828_v34  ;;  %v2544_v39 = vld [vmem:[%s2663_s5] sm:$0xff]  ;;  %v835_v33 = vmul.f32 %v824_v26, %v2467_v28  ;;  %s2665_s5 = sld [smem:[#allocation28_spill]] }
 0x32d   : > { %678 = vrot.lane.b32.xlu0 %v670_v63, %s2040_s30  ;;  %v1556_v41 = vcombine.high %v2544_v39, %v2544_v39  ;;  %v840_v47 = vpack.c.bf16 %v837_v45, %v834_v44  ;;  %v1291_v44 = vld [vmem:[#allocation15 + $0x40] sm:$0xff]  ;;  %v1293_v45 = vld [vmem:[#allocation15 + $0x50] sm:$0xff] }
 0x32e   : > { %676 = vrot.lane.b32.xlu1 %v669_v2, %s2040_s30  ;;  %v839_v43 = vpack.c.bf16 %v836_v38, %v833_v36  ;;  %v838_v46 = vpack.c.bf16 %v835_v33, %v832_v42  ;;  %v1287_v36 = vld [vmem:[#allocation15 + $0x20] sm:$0xff]  ;;  %v1289_v38 = vld [vmem:[#allocation15 + $0x30] sm:$0xff]  ;;  %v1294_v42 = vld [vmem:[#allocation15 + $0x58] sm:$0xff] }
 0x32f   : > { %1557 = vmatprep.mubr.msk.bf16.mxu0 %vm657_vm10, %v1556_v41  ;;  %v1292_v41 = vld [vmem:[#allocation15 + $0x48] sm:$0xff]  ;;  %v1614_v33 = vpack.c.bf16 %v1289_v38, %v1287_v36 }
 0x331   : > { %701 = vrot.lane.b32.xlu0 %v2488_v40, %s2041_s15 }
 0x332   : > { %674 = vrot.lane.b32.xlu1 %v668_v4, %s2040_s30  ;;  %s2664_s30 = sld [smem:[#allocation27_spill]] }
 0x335   : > { %699 = vrot.lane.b32.xlu0 %v2503_v52, %s2041_s15 }
 0x336   : > { %703 = vrot.lane.b32.xlu1 %v2480_v37, %s2041_s15  ;;  %s1941_s15 = scalar_lea.vmem %s1940_s25, 512 }
 0x338   : > { %v1199_v27 = vld [vmem:[%s2664_s30] sm:$0xff] }
 0x339   : > { %743 = vrot.lane.b32.xlu0 %v735_v15, %s2042_s14 }
 0x33a   : > { %741 = vrot.lane.b32.xlu1 %v734_v18, %s2042_s14 }
 0x33d   : > { %781 = vrot.lane.b32.xlu0 %v774_v21, %s2046_s13  ;;  %v1283_v21 = vld [vmem:[#allocation15] sm:$0xff] }
 0x33e   : > { %739 = vrot.lane.b32.xlu1 %v733_v24, %s2042_s14  ;;  %v1288_v24 = vld [vmem:[#allocation15 + $0x28] sm:$0xff]  ;;  %v1610_v34 = vpack.c.bf16 %v1285_v22, %v1283_v21 }
 0x341   : > { %779 = vrot.lane.b32.xlu0 %v773_v32, %s2046_s13  ;;  %v1555_v32 = vcombine.low %v2544_v39, %v2544_v39  ;;  %v1618_v39 = vpack.c.bf16 %v1293_v45, %v1291_v44 }
 0x342   : > { %783 = vrot.lane.b32.xlu1 %v775_v35, %s2046_s13  ;;  %v1612_v35 = vpack.c.bf16 %v1290_v25, %v1288_v24  ;;  %s1409_s13 = sshll.u32 %s511_s2, 4  ;;  %s2575_s13 = int_to_ptr.vmem [resolvable:$true] %s1409_s13 }
 0x343   : > { %p1942_p1 = scmp.lt.s32.totalorder %s2575_s13, %s1940_s25 }
 0x345   : > { %808 = vrot.lane.b32.xlu0 %v2480_v37, %s2047_s19  ;;  %v1200_v37 = vld [vmem:[%s2664_s30 + $0x8] sm:$0xff] }
 0x346   : > { %806 = vrot.lane.b32.xlu1 %v2488_v40, %s2047_s19 }
 0x349   : > { %846 = vrot.lane.b32.xlu0 %v839_v43, %s2048_s28  ;;  %v1616_v43 = vpack.c.bf16 %v1294_v42, %v1292_v41 }
 0x34a   : > { %804 = vrot.lane.b32.xlu1 %v2503_v52, %s2047_s19  ;;  %s2573_s19 = scalar_lea.hbm %s2665_s5, %s1579_s18 }
 0x34d   : > { %844 = vrot.lane.b32.xlu0 %v838_v46, %s2048_s28  ;;  %v1296_v46 = vld [vmem:[#allocation15 + $0x68] sm:$0xff] }
 0x34e   : > { %848 = vrot.lane.b32.xlu1 %v840_v47, %s2048_s28  ;;  %v1298_v47 = vld [vmem:[#allocation15 + $0x78] sm:$0xff]  ;;  %s1935_s28 = scalar_lea.vmem %s2575_s13, 256 }
 0x34f   : > { %p1936_p13 = scmp.ne.s32.totalorder %s2575_s13, %s1935_s28  ;;  %p1943_p3 = scmp.lt.s32.totalorder %s1941_s15, %s1935_s28 }
 0x351   : > { %1208 = vperm.xlu0 %1750, %v1200_v37   ;;  %v1620_v37 = vpack.c.bf16 %v1298_v47, %v1296_v46  ;;  %p1937_p7 = pnand %p1936_p13, %p2666_p5  ;;  %p1944_p9 = por %p1943_p3, %p1942_p1 }
 0x352   : > { %1203 = vperm.xlu1 %1749, %v1199_v27   ;;  %v1295_v27 = vld [vmem:[#allocation15 + $0x60] sm:$0xff] }
 0x353   : > { %p1938_p4 = pneg %p1937_p7 }
 0x355   : > { %p1945_p6 = pnand %p1944_p9, %p1938_p4 }
 0x393   : > { %v590_v28 = vpop.permute.xlu0 %589 }
 0x394   : > { %v588_v30 = vpop.permute.xlu1 %587 }
 0x395   : > { %v593_v31 = vsel %vm591_vm0, %v588_v30, %v590_v28  ;;  %v1297_v28 = vld [vmem:[#allocation15 + $0x70] sm:$0xff] }
 0x396   : > { %887 = vmatprep.subr.bf16.mxu0 %v593_v31 }
 0x397   : > { %v637_v40 = vpop.permute.xlu0 %636 }
 0x398   : > { %v586_v48 = vpop.permute.xlu1 %585 }
 0x399   : > { %v592_v49 = vsel %vm591_vm0, %v586_v48, %v588_v30  ;;  %v1622_v30 = vpack.c.bf16 %v1297_v28, %v1295_v27 }
 0x39a   : > { %888 = vmatpush1.bf16.msra.mxu0 %v592_v49 }
 0x39b   : > { %v635_v50 = vpop.permute.xlu0 %634 }
 0x39c   : > { %v639_v51 = vpop.permute.xlu1 %638  ;;  %v641_v53 = vsel %vm640_vm1, %v635_v50, %v637_v40 }
 0x39d   : > { %v642_v52 = vsel %vm640_vm1, %v637_v40, %v639_v51 }
 0x39e   : > { %889 = vmatprep.subr.bf16.mxu0 %v642_v52 }
 0x39f   : > { %v679_v54 = vpop.permute.xlu0 %678  ;;  %890 = vmatpush1.bf16.msra.mxu0 %v641_v53 }
 0x3a0   : > { %v677_v55 = vpop.permute.xlu1 %676 }
 0x3a1   : > { %v682_v56 = vsel %vm680_vm2, %v677_v55, %v679_v54 }
 0x3a2   : > { %891 = vmatprep.subr.bf16.mxu0 %v682_v56 }
 0x3a3   : > { %v702_v57 = vpop.permute.xlu0 %701 }
 0x3a4   : > { %v675_v58 = vpop.permute.xlu1 %674 }
 0x3a5   : > { %v681_v59 = vsel %vm680_vm2, %v675_v58, %v677_v55 }
 0x3a6   : > { %892 = vmatpush1.bf16.msra.mxu0 %v681_v59 }
 0x3a7   : > { %v700_v60 = vpop.permute.xlu0 %699 }
 0x3a8   : > { %v704_v61 = vpop.permute.xlu1 %703  ;;  %v706_v63 = vsel %vm705_vm4, %v700_v60, %v702_v57 }
 0x3a9   : > { %v707_v62 = vsel %vm705_vm4, %v702_v57, %v704_v61 }
 0x3aa   : > { %893 = vmatprep.subr.bf16.mxu0 %v707_v62 }
 0x3ab   : > { %v744_v29 = vpop.permute.xlu0 %743  ;;  %894 = vmatpush1.bf16.msra.mxu0 %v706_v63 }
 0x3ac   : > { %v742_v1 = vpop.permute.xlu1 %741 }
 0x3ad   : > { %v747_v2 = vsel %vm745_vm5, %v742_v1, %v744_v29 }
 0x3ae   : > { %895 = vmatprep.subr.bf16.mxu0 %v747_v2 }
 0x3af   : > { %v782_v3 = vpop.permute.xlu0 %781 }
 0x3b0   : > { %v740_v4 = vpop.permute.xlu1 %739 }
 0x3b1   : > { %v746_v5 = vsel %vm745_vm5, %v740_v4, %v742_v1 }
 0x3b2   : > { %896 = vmatpush1.bf16.msra.mxu0 %v746_v5 }
 0x3b3   : > { %v780_v6 = vpop.permute.xlu0 %779 }
 0x3b4   : > { %v784_v7 = vpop.permute.xlu1 %783  ;;  %v786_v9 = vsel %vm785_vm6, %v780_v6, %v782_v3 }
 0x3b5   : > { %v787_v8 = vsel %vm785_vm6, %v782_v3, %v784_v7 }
 0x3b6   : > { %897 = vmatprep.subr.bf16.mxu0 %v787_v8 }
 0x3b7   : > { %v809_v10 = vpop.permute.xlu0 %808  ;;  %898 = vmatpush1.bf16.msra.mxu0 %v786_v9 }
 0x3b8   : > { %v807_v11 = vpop.permute.xlu1 %806 }
 0x3b9   : > { %v812_v12 = vsel %vm810_vm7, %v807_v11, %v809_v10 }
 0x3ba   : > { %899 = vmatprep.subr.bf16.mxu0 %v812_v12 }
 0x3bb   : > { %v847_v13 = vpop.permute.xlu0 %846 }
 0x3bc   : > { %v805_v14 = vpop.permute.xlu1 %804 }
 0x3bd   : > { %v811_v15 = vsel %vm810_vm7, %v805_v14, %v807_v11 }
 0x3be   : > { %900 = vmatpush1.bf16.msra.mxu0 %v811_v15 }
 0x3bf   : > { %v845_v18 = vpop.permute.xlu0 %844 }
 0x3c0   : > { %v849_v19 = vpop.permute.xlu1 %848  ;;  %v851_v26 = vsel %vm850_vm8, %v845_v18, %v847_v13 }
 0x3c1   : > { %v852_v23 = vsel %vm850_vm8, %v847_v13, %v849_v19 }
 0x3c2   : > { %901 = vmatprep.subr.bf16.mxu0 %v852_v23 }
 0x3c3   : > { %902 = vmatpush1.bf16.msra.mxu0 %v851_v26 }
 0x3c4   : > { %1609 = vmatprep.subr.bf16.mxu0 %v1608_v20 }
 0x3c6   : > { %918 = vmatmul.mubr.bf16.vlgmr.msra.gmra.mrb[0].mxu0 %v1555_v32 }
 0x3c7   : > { %1611 = vmatpush1.bf16.msra.mxu0 %v1610_v34  ;;  %1369 = vmatprep.mubr.f32.mxu0 %v2027_v0 }
 0x3c8   : > { %1613 = vmatprep.subr.bf16.mxu0 %v1612_v35 }
 0x3cb   : > { %1615 = vmatpush1.bf16.msra.mxu0 %v1614_v33 }
 0x3cc   : > { %1617 = vmatprep.subr.bf16.mxu0 %v1616_v43 }
 0x3cf   : > { %1619 = vmatpush1.bf16.msra.mxu0 %v1618_v39 }
 0x3d0   : > { %1621 = vmatprep.subr.bf16.mxu0 %v1620_v37  ;;  %v1209_v48 = vpop.permute.xlu0 %1208 }
 0x3d1   : > { %v1204_v31 = vpop.permute.xlu1 %1203 }
 0x3d3   : > { %1623 = vmatpush1.bf16.msra.mxu0 %v1622_v30 }
 0x3ff   : > { %v1257_v40 = vpop.f32.mrb[8].mxu1 }
 0x400   : > { %v1258_v49 = vadd.f32 %v1257_v40, %v1204_v31  ;;  %v1259_v50 = vpop.f32.mrb[9].mxu1 }
 0x401   : > { %v1260_v51 = vpop.f32.mrb[10].mxu1 }
 0x402   : > { %1571 = vmatmul.mubr.msk.f32.vlgmr.msra.gmra.mrb[4].mxu0 %vm1033_vm3, %v1258_v49  ;;  %v1261_v52 = vadd.f32 %v1260_v51, %v1209_v48  ;;  %v1262_v53 = vpop.f32.mrb[11].mxu1 }
 0x403   : > { %1375 = vmatprep.mubr.f32.mxu0 %v2027_v0 }
 0x406   : > { %1572 = vmatmul.mubr.msk.f32.gmra.mrb[6].mxu0 %vm1033_vm3, %v1261_v52 }
 0x499   : > { %v919_v54 = vpop.f32.mrb[0].mxu0 }
 0x49a   : > { %v921_v55 = vpop.f32.mrb[1].mxu0  ;;  %v1268_v56 = vmul.f32 %v919_v54, %v919_v54 }
 0x49b   : > { %v923_v57 = vpop.f32.mrb[2].mxu0  ;;  %v1264_v58 = vadd.f32 %v921_v55, %v919_v54  ;;  %v1269_v59 = vmul.f32 %v921_v55, %v921_v55 }
 0x49c   : > { %v924_v60 = vpop.f32.mrb[3].mxu0 }
 0x49d   : > { %1265 = vadd.xlane.f32.xlu1 %v1264_v58  ;;  %v1270_v61 = vadd.f32 %v1269_v59, %v1268_v56 }
 0x49f   : > { %1271 = vadd.xlane.f32.xlu0 %v1270_v61 }
 0x4d5   : > { %v1371_v62 = vpop.f32.mrb[4].mxu0 }
 0x4d6   : > { %v1373_v63 = vpop.f32.mrb[5].mxu0  ;;  %v1382_v9 = vmul.f32 0.3, %v1371_v62 }
 0x4d7   : > { %v1383_v10 = vmul.f32 0.3, %v1373_v63 }
 0x4d8   : > { %v1384_v13 = vadd.f32 1.0, %v1382_v9 }
 0x4d9   : > { %v1377_v29 = vpop.f32.mrb[6].mxu0  ;;  %v1385_v14 = vadd.f32 1.0, %v1383_v10 }
 0x4da   : > { %v1379_v1 = vpop.f32.mrb[7].mxu0  ;;  %v1388_v20 = vmul.f32 0.3, %v1377_v29 }
 0x4db   : > { %v1389_v21 = vmul.f32 0.3, %v1379_v1 }
 0x52a   : > { %v1266_v2 = vpop.xlane.xlu1 %1265 }
 0x52b   : > { %v1267_v3 = vmul.f32 0.00390625, %v1266_v2 }
 0x52c   : > { %v1272_v0 = vpop.xlane.xlu0 %1271 }
 0x52d   : > { %v1273_v4 = vmul.f32 0.00390625, %v1272_v0  ;;  %v1274_v5 = vmul.f32 %v1267_v3, %v1267_v3  ;;  %v1277_v11 = vsub.f32 %v919_v54, %v1267_v3  ;;  %v1278_v12 = vsub.f32 %v921_v55, %v1267_v3 }
 0x52f   : > { %v1275_v6 = vsub.f32 %v1273_v4, %v1274_v5 }
 0x531   : > { %v1276_v7 = vmax.f32 %v1275_v6, 0.0 }
 0x533   : > { %v1279_v8 = vadd.f32 1e-05, %v1276_v7 }
 0x535   : > { %1763 = vrsqrt.f32 %v1279_v8 }
 0x53f   : > { %v1764_v15 = vpop.eup %1763 }
 0x540   : > { %v1281_v16 = vmul.f32 %v1764_v15, %v1277_v11  ;;  %v1282_v17 = vmul.f32 %v1764_v15, %v1278_v12 }
 0x542   : > { %v1386_v18 = vmul.f32 %v1384_v13, %v1281_v16  ;;  %v1387_v19 = vmul.f32 %v1385_v14, %v1282_v17 }
 0x544   : > { %v1390_v22 = vadd.f32 %v1388_v20, %v1386_v18  ;;  %v1391_v23 = vadd.f32 %v1389_v21, %v1387_v19 }
 0x546   : > { %1392 = vst [vmem:[%s511_s2] sm:$0xff] %v1390_v22  ;;  %1393 = vst [vmem:[%s511_s2 + $0x8] sm:$0xff] %v1391_v23 }
 0x547   : > { %1948 = shalt.err (!%p1945_p6)
}
 0x548   : > { %s1949_s6 = scalar_lea.hbm %s2573_s19, 256  ;;  %s1953_s18 = scalar_lea.hbm %s2665_s5, 512 }
 0x549   : > { %p1950_p0 = scmp.ne.s32.totalorder %s2573_s19, %s1949_s6  ;;  %p1954_p10 = scmp.lt.u32.totalorder %s2573_s19, %s2665_s5 }
 0x54a   : > { %p1955_p12 = scmp.lt.u32.totalorder %s1953_s18, %s1949_s6  ;;  %p1957_p13 = scmp.lt.u32.totalorder %s1949_s6, %s2573_s19 }
 0x54b   : > { %p1951_p2 = pnand %p1950_p0, %p2666_p5 }
 0x54c   : > { %p1956_p11 = por %p1955_p12, %p1954_p10 }
 0x54d   : > { %p1952_p8 = pneg %p1951_p2 }
 0x54e   : > { %p1958_p7 = por %p1957_p13, %p1956_p11 }
 0x550   : > { %p1959_p4 = pnand %p1958_p7, %p1952_p8 }
 0x552   : > { %1962 = shalt.err (!%p1959_p4)
}
 0x553   : > { %1646 = dma.vmem_to_hbm [thread:$0]  (%p2666_p5), %s2575_s13, 256, %s2573_s19, %s1395_s27  }
 0x554 PF: > { %s1421_s17 = sand.u32 1, %s2001_s21   ;;  %p2667_p1 = scmp.ne.s32.totalorder %s2653_s3, 0 }
 0x555   : > { %p2668_p3 = scmp.ge.s32.totalorder %s2013_s24, 2  ;;  %s1422_s28 = scalar_lea.sflag [#allocation8], %s1421_s17 }
 0x557   : > { %p1669_p9 = pnand %p2668_p3, %p2667_p1 }
 0x559   : > { %1996 = dma.done.wait (!%p1669_p9), %s1422_s28, 256  }
 0x55a   : > { %1998 = vsyncadd (!%p1669_p9), %s1422_s28, 4294967040  ;;  %p28_p6 = scmp.ge.s32.totalorder %s2272_s9, 4   ;;  %s2669_s21 = smov %s2005_s22 }
 0x55b   : > { %s2670_s22 = smov %s2009_s23  ;;  %s2671_s23 = smov %s2284_s12 }
 0x55c   : > { %s2672_s24 = smov %s2272_s9  ;;  %30 = sbr.rel (!%p28_p6) target bundleno = 15 (0xf), region = 137 }
 0x563   :  { %1427 = vsyncpa [#allocation7], 1 }
 0x564   :  { %1429 = vsyncpa [#allocation7 + $0x1], 1 }
 0x565   :  { %1430 = vsyncpa [#allocation10], 1 }
 0x566   :  { %1431 = vsyncpa [#allocation13], 1 }
 0x567   :  { %1432 = vsyncpa [#allocation16], 1 }
 0x568   :  { %1433 = vsyncpa [#allocation8], 1 }
 0x569   :  { %1435 = vsyncpa [#allocation8 + $0x1], 1 }

</bundles_post_ra>
